<compile_context>
chip_gen: v7x
topology: tpu7x:2x2x1
jax: 0.10.0
libtpu: 0.0.40
codegen_flags: <defaults>
</compile_context>

<pallas_src>
import functools
import math

import jax
import jax.numpy as jnp
from jax.experimental import pallas as pl
from jax.experimental.pallas import tpu as pltpu

_EPS_BN = 1e-5


# ----------------------------- fused Pallas kernel -----------------------------

def _fused_kernel(*refs, B, N, T, RC, p, p1):
    (xf_ref, wstart_ref, bstart_ref,
     wt0, bt0, ws0, bs0, pm0, pt0,
     wt1, bt1, ws1, bs1, pm1, pt1,
     wt2, bt2, ws2, bs2, pm2, pt2,
     gam_ref, bet_ref, n2t_ref, n1t_ref, wg_ref, bg_ref,
     c1_ref, w1h_ref, w1b_ref, b1b_ref,
     c0_ref, w0h_ref, w0b_ref, b0b_ref,
     t_ref, ytar_ref, task_mmd_ref,
     ypack_ref, loss_ref) = refs

    f32 = jnp.float32

    # ---- start conv (1x1, folded over time into one matmul) ----
    x = jnp.dot(xf_ref[...], wstart_ref[...],
                preferred_element_type=f32) + bstart_ref[...]        # (M, T*RC)

    gam = gam_ref[...]                                               # (3, RC)
    bet = bet_ref[...]

    layer_refs = ((wt0, bt0, ws0, bs0, pm0, pt0),
                  (wt1, bt1, ws1, bs1, pm1, pt1),
                  (wt2, bt2, ws2, bs2, pm2, pt2))

    skip = None
    Tc = T
    for i, (wt, bt, ws, bs, pm, pt) in enumerate(layer_refs):
        d = 2 ** i
        To = Tc - d
        L = To * RC
        residual = x

        # gated dilated temporal conv: one wide matmul -> [filter | gate]
        fg = jnp.dot(x, wt[...], preferred_element_type=f32) + bt[...]
        xg = jnp.tanh(fg[:, :L]) * jax.nn.sigmoid(fg[:, L:])          # (M, To*RC)

        # skip 1x1 conv (block-diag weight) + skip accumulation (last To steps)
        s = jnp.dot(xg, ws[...], preferred_element_type=f32) + bs[...]
        skip = s if skip is None else s + skip[:, skip.shape[1] - L:]

        # residual add (last To timesteps of the layer input)
        y = xg + residual[:, residual.shape[1] - L:]

        # BatchNorm2d (training-mode batch stats over B*N*To per channel)
        colmean = jnp.mean(y, axis=0, keepdims=True)                  # (1, To*RC)
        colmean2 = jnp.mean(y * y, axis=0, keepdims=True)
        inv_to = 1.0 / To
        mean_ch = jnp.dot(colmean, pm[...], preferred_element_type=f32) * inv_to
        mean2_ch = jnp.dot(colmean2, pm[...], preferred_element_type=f32) * inv_to
        var_ch = mean2_ch - mean_ch * mean_ch
        scale_ch = gam[i:i + 1, :] * jax.lax.rsqrt(var_ch + _EPS_BN)  # (1, RC)
        shift_ch = bet[i:i + 1, :] - mean_ch * scale_ch
        scale_f = jnp.dot(scale_ch, pt[...], preferred_element_type=f32)
        shift_f = jnp.dot(shift_ch, pt[...], preferred_element_type=f32)
        x = y * scale_f + shift_f
        Tc = To
    # Tc == 1 here; skip: (M, RC)

    # ---- adaptive adjacency, emitted pre-transposed ----
    # adp   = softmax(relu(n1 @ n2), axis=1)
    # adp^T = softmax(relu(n2^T @ n1^T), axis=0)  (computed directly)
    st = jnp.maximum(jnp.dot(n2t_ref[...], n1t_ref[...],
                             preferred_element_type=f32), 0.0)        # (N, N)
    st = st - jnp.max(st, axis=0, keepdims=True)
    e = jnp.exp(st)
    adpT = e / jnp.sum(e, axis=0, keepdims=True)                      # (N, N)

    # ---- GCN (order 2, single support) on skip ----
    h_parts = []
    for b in range(B):
        x0 = skip[b * N:(b + 1) * N, :]                               # (N, RC)
        x1 = jnp.dot(adpT, x0, preferred_element_type=f32)
        x2 = jnp.dot(adpT, x1, preferred_element_type=f32)
        h_parts.append(jnp.concatenate([x0, x1, x2], axis=1))         # (N, 3RC)
    hcat = jnp.concatenate(h_parts, axis=0)                           # (M, 3RC)
    g = jnp.dot(hcat, wg_ref[...], preferred_element_type=f32) + bg_ref[...]
    hr = jnp.maximum(g, 0.0)                                          # relu(gconv out)

    # ---- hypothesis heads (task-embedding term folded into c1/c0) ----
    u1 = jnp.maximum(jnp.dot(hr, w1h_ref[...],
                             preferred_element_type=f32) + c1_ref[...], 0.0)
    y1 = jax.nn.sigmoid(jnp.sum(u1 * w1b_ref[...], axis=1, keepdims=True)
                        + b1b_ref[...])
    u0 = jnp.maximum(jnp.dot(hr, w0h_ref[...],
                             preferred_element_type=f32) + c0_ref[...], 0.0)
    y0 = jax.nn.sigmoid(jnp.sum(u0 * w0b_ref[...], axis=1, keepdims=True)
                        + b0b_ref[...])

    t = t_ref[...]
    yhat = jnp.where(t > 0, y1, y0)

    # ---- BCE (torch-style log clamping: log >= -100, NaN-safe) ----
    ytar = ytar_ref[...]
    logy = jnp.maximum(jnp.log(yhat), -100.0)
    log1my = jnp.maximum(jnp.log(1.0 - yhat), -100.0)
    bce = jnp.mean(-(ytar * logy + (1.0 - ytar) * log1my),
                   axis=0, keepdims=True)                             # (1, 1)

    # ---- linear MMD balance (task-column contribution added analytically) ----
    mt = (t > 0).astype(f32)
    mc = 1.0 - mt
    nt = jnp.maximum(jnp.sum(mt, axis=0, keepdims=True), 1.0)
    nc = jnp.maximum(jnp.sum(mc, axis=0, keepdims=True), 1.0)
    mean_t = jnp.sum(hr * mt, axis=0, keepdims=True) / nt             # (1, RC)
    mean_c = jnp.sum(hr * mc, axis=0, keepdims=True) / nc
    diff = 2.0 * p * mean_t - 2.0 * (1.0 - p) * mean_c
    mmd = jnp.sum(diff * diff, axis=1, keepdims=True) + task_mmd_ref[...]

    loss_ref[...] = bce + p1 * mmd
    ypack_ref[...] = jnp.concatenate([yhat, y0, y1], axis=1)          # (M, 3)


# ----------------------------- forward pass -----------------------------

def cape_cau_forward(params, X, A, C, Y, Cc, *, h_dim=32, p=0.5, p1=0.5):
    del A, Cc  # self.supports == [] in the reference; A/Cc unused in forward
    f32 = jnp.float32
    B, T, N, Fdim = X.shape
    RC = h_dim // 2                              # residual/dilation/skip/end channels
    receptive_field = 8                          # layers=3, kernel=2, dil 1,2,4
    assert T <= receptive_field, "model collapses time to 1 only for T <= receptive_field"

    x = jnp.transpose(X, (0, 2, 1, 3)).astype(f32)        # (B, N, T, F)
    if T < receptive_field:
        x = jnp.pad(x, ((0, 0), (0, 0), (receptive_field - T, 0), (0, 0)))
        T = receptive_field
    M = B * N
    xf = x.reshape(M, T * Fdim)                           # time folded into lanes

    eyeRC = jnp.eye(RC, dtype=f32)

    # start conv folded over time (block-diagonal weight)
    wstart = jnp.kron(jnp.eye(T, dtype=f32), params["w_start"])       # (T*F, T*RC)
    bstart = jnp.tile(params["b_start"], (1, T))

    # per-layer banded / block-diag weights + BN fold matrices
    layer_inputs = []
    gammas, betas = [], []
    Tc = T
    for i in range(3):
        d = 2 ** i
        To = Tc - d
        lay = params["layers"][i]
        M0 = jnp.eye(Tc, To, dtype=f32)          # tap at t
        M1 = jnp.eye(Tc, To, k=-d, dtype=f32)    # tap at t + d
        wf = jnp.kron(M0, lay["wf0"]) + jnp.kron(M1, lay["wf1"])
        wgk = jnp.kron(M0, lay["wg0"]) + jnp.kron(M1, lay["wg1"])
        wtcn = jnp.concatenate([wf, wgk], axis=1)                     # (Tc*RC, 2*To*RC)
        btcn = jnp.concatenate([jnp.tile(lay["bf"], (1, To)),
                                jnp.tile(lay["bg"], (1, To))], axis=1)
        wskip = jnp.kron(jnp.eye(To, dtype=f32), lay["wskip"])        # block-diag
        bskip = jnp.tile(lay["bskip"], (1, To))
        pm = jnp.kron(jnp.ones((To, 1), f32), eyeRC)                  # fold  (To*RC, RC)
        pt = jnp.kron(jnp.ones((1, To), f32), eyeRC)                  # unfold (RC, To*RC)
        layer_inputs += [wtcn, btcn, wskip, bskip, pm, pt]
        gammas.append(lay["gamma"])
        betas.append(lay["beta"])
        Tc = To
    assert Tc == 1
    gammas = jnp.concatenate(gammas, axis=0)     # (3, RC)
    betas = jnp.concatenate(betas, axis=0)

    # adaptive adjacency: pass transposed nodevecs so adp^T is computed directly
    n2t = params["nodevec2"].T                   # (N, 10)
    n1t = params["nodevec1"].T                   # (10, N)

    # heads: fold the constant task-embedding contribution into a bias row
    task = params["task"]                        # (1, RC)
    c1 = jnp.dot(task, params["w1a"][:RC]) + params["b1a"]
    c0 = jnp.dot(task, params["w0a"][:RC]) + params["b0a"]
    w1h = params["w1a"][RC:]
    w0h = params["w0a"][RC:]
    # analytic task-column contribution to the linear MMD
    task_mmd = (((4.0 * p - 2.0) ** 2) * jnp.sum(task * task)).reshape(1, 1)

    t2 = C.reshape(M, 1).astype(f32)
    y2 = Y.reshape(M, 1).astype(f32)

    inputs = [xf, wstart, bstart, *layer_inputs, gammas, betas, n2t, n1t,
              params["w_gconv"], params["b_gconv"],
              c1, w1h, params["w1b"], params["b1b"],
              c0, w0h, params["w0b"], params["b0b"],
              t2, y2, task_mmd]

    kernel = functools.partial(_fused_kernel, B=B, N=N, T=T, RC=RC, p=p, p1=p1)
    vm = pl.BlockSpec(memory_space=pltpu.MemorySpace.VMEM)
    ypack, loss = pl.pallas_call(
        kernel,
        out_shape=(jax.ShapeDtypeStruct((M, 3), f32),
                   jax.ShapeDtypeStruct((1, 1), f32)),
        in_specs=[vm] * len(inputs),
        out_specs=(vm, vm),
    )(*inputs)

    return loss[0, 0], ypack[:, 0], ypack[:, 1], ypack[:, 2]


# ----------------------------- parameter init -----------------------------

def init_params(key, in_dim, num_nodes, h_dim=32):
    RC = h_dim // 2
    keys = iter(jax.random.split(key, 64))

    def xavier(shape, fan_in, fan_out):
        bound = math.sqrt(6.0 / (fan_in + fan_out))
        return jax.random.uniform(next(keys), shape, jnp.float32, -bound, bound)

    def unif(shape, fan):
        bound = 1.0 / math.sqrt(fan)
        return jax.random.uniform(next(keys), shape, jnp.float32, -bound, bound)

    params = {
        "w_start": xavier((in_dim, RC), in_dim, RC),
        "b_start": unif((1, RC), RC),
        "nodevec1": xavier((num_nodes, 10), num_nodes, 10),
        "nodevec2": xavier((10, num_nodes), 10, num_nodes),
        "task": xavier((1, RC), RC, 1),            # task_embedding (task_dim, 1) as row
        "w_gconv": xavier((3 * RC, RC), 3 * RC, RC),
        "b_gconv": unif((1, RC), RC),
        "w1a": xavier((2 * RC, RC), 2 * RC, RC),   # rows: [task part ; h part]
        "b1a": unif((1, RC), RC),
        "w1b": xavier((1, RC), RC, 1),             # out_dim=1 head weight as row vector
        "b1b": unif((1, 1), 1),
        "w0a": xavier((2 * RC, RC), 2 * RC, RC),
        "b0a": unif((1, RC), RC),
        "w0b": xavier((1, RC), RC, 1),
        "b0b": unif((1, 1), 1),
        "layers": [],
    }
    for _ in range(3):
        params["layers"].append({
            "wf0": xavier((RC, RC), 2 * RC, 2 * RC),
            "wf1": xavier((RC, RC), 2 * RC, 2 * RC),
            "bf": unif((1, RC), RC),
            "wg0": xavier((RC, RC), 2 * RC, 2 * RC),
            "wg1": xavier((RC, RC), 2 * RC, 2 * RC),
            "bg": unif((1, RC), RC),
            "wskip": xavier((RC, RC), RC, RC),
            "bskip": unif((1, RC), RC),
            "gamma": unif((1, RC), RC),
            "beta": unif((1, RC), RC),
        })
    return params


# ----------------------------- demo -----------------------------

if __name__ == "__main__":
    B, T, N, F, H = 2, 8, 8, 4, 32                     # bs, timesteps, nodes, features, h_dim
    key = jax.random.PRNGKey(0)
    kx, ky, kp = jax.random.split(key, 3)

    X = jax.random.normal(kx, (B, T, N, F), jnp.float32)              # (bs, T, nodes, features)
    A = jnp.eye(N, dtype=jnp.float32)                                  # unused by forward
    Ctr = (jnp.arange(B * N) % 2).reshape(B, N).astype(jnp.float32)    # binary treatment
    Ytar = jax.random.uniform(ky, (B, N), jnp.float32, 0.05, 0.95)     # BCE targets in (0,1)
    Cc = jnp.zeros((B, N), jnp.float32)                                # unused by forward

    params = init_params(kp, F, N, H)
    fwd = jax.jit(functools.partial(cape_cau_forward, h_dim=H, p=0.5, p1=0.5))
    loss, y, y0, y1 = fwd(params, X, A, Ctr, Ytar, Cc)
    jax.block_until_ready((loss, y, y0, y1))

    assert y.shape == (B * N,) and y0.shape == (B * N,) and y1.shape == (B * N,)
    assert bool(jnp.isfinite(loss))
    print("KERNEL_OK")
</pallas_src>

<mosaic_0001>
module attributes {stable_mosaic.version = 11 : i64} {
  func.func @_fused_kernel(%arg0: memref<16x32xf32, #tpu.memory_space<vmem>>, %arg1: memref<32x128xf32, #tpu.memory_space<vmem>>, %arg2: memref<1x128xf32, #tpu.memory_space<vmem>>, %arg3: memref<128x224xf32, #tpu.memory_space<vmem>>, %arg4: memref<1x224xf32, #tpu.memory_space<vmem>>, %arg5: memref<112x112xf32, #tpu.memory_space<vmem>>, %arg6: memref<1x112xf32, #tpu.memory_space<vmem>>, %arg7: memref<112x16xf32, #tpu.memory_space<vmem>>, %arg8: memref<16x112xf32, #tpu.memory_space<vmem>>, %arg9: memref<112x160xf32, #tpu.memory_space<vmem>>, %arg10: memref<1x160xf32, #tpu.memory_space<vmem>>, %arg11: memref<80x80xf32, #tpu.memory_space<vmem>>, %arg12: memref<1x80xf32, #tpu.memory_space<vmem>>, %arg13: memref<80x16xf32, #tpu.memory_space<vmem>>, %arg14: memref<16x80xf32, #tpu.memory_space<vmem>>, %arg15: memref<80x32xf32, #tpu.memory_space<vmem>>, %arg16: memref<1x32xf32, #tpu.memory_space<vmem>>, %arg17: memref<16x16xf32, #tpu.memory_space<vmem>>, %arg18: memref<1x16xf32, #tpu.memory_space<vmem>>, %arg19: memref<16x16xf32, #tpu.memory_space<vmem>>, %arg20: memref<16x16xf32, #tpu.memory_space<vmem>>, %arg21: memref<3x16xf32, #tpu.memory_space<vmem>>, %arg22: memref<3x16xf32, #tpu.memory_space<vmem>>, %arg23: memref<8x10xf32, #tpu.memory_space<vmem>>, %arg24: memref<10x8xf32, #tpu.memory_space<vmem>>, %arg25: memref<48x16xf32, #tpu.memory_space<vmem>>, %arg26: memref<1x16xf32, #tpu.memory_space<vmem>>, %arg27: memref<1x16xf32, #tpu.memory_space<vmem>>, %arg28: memref<16x16xf32, #tpu.memory_space<vmem>>, %arg29: memref<1x16xf32, #tpu.memory_space<vmem>>, %arg30: memref<1x1xf32, #tpu.memory_space<vmem>>, %arg31: memref<1x16xf32, #tpu.memory_space<vmem>>, %arg32: memref<16x16xf32, #tpu.memory_space<vmem>>, %arg33: memref<1x16xf32, #tpu.memory_space<vmem>>, %arg34: memref<1x1xf32, #tpu.memory_space<vmem>>, %arg35: memref<16x1xf32, #tpu.memory_space<vmem>>, %arg36: memref<16x1xf32, #tpu.memory_space<vmem>>, %arg37: memref<1x1xf32, #tpu.memory_space<vmem>>, %arg38: memref<16x3xf32, #tpu.memory_space<vmem>>, %arg39: memref<1x1xf32, #tpu.memory_space<vmem>>) attributes {dimension_semantics = [], scalar_prefetch = 0 : i64, scratch_operands = 0 : i64, tpu.core_type = #tpu.core_type<tc>} {
    %c0 = arith.constant 0 : index
    %c0_0 = arith.constant 0 : index
    %0 = vector.load %arg0[%c0, %c0_0] : memref<16x32xf32, #tpu.memory_space<vmem>>, vector<16x32xf32>
    %c0_1 = arith.constant 0 : index
    %c0_2 = arith.constant 0 : index
    %1 = vector.load %arg1[%c0_1, %c0_2] : memref<32x128xf32, #tpu.memory_space<vmem>>, vector<32x128xf32>
    %cst = arith.constant dense<0.000000e+00> : vector<16x128xf32>
    %2 = tpu.matmul %0, %1, %cst {dimension_numbers = #tpu.dot_dimension_numbers<[1], [0], [0], [1], [0, 0, 1, 1], [], []>} : vector<16x32xf32>, vector<32x128xf32>, vector<16x128xf32> -> vector<16x128xf32>
    %c0_3 = arith.constant 0 : index
    %c0_4 = arith.constant 0 : index
    %3 = vector.load %arg2[%c0_3, %c0_4] : memref<1x128xf32, #tpu.memory_space<vmem>>, vector<1x128xf32>
    %4 = vector.broadcast %3 : vector<1x128xf32> to vector<16x128xf32>
    %5 = arith.addf %2, %4 : vector<16x128xf32>
    %c0_5 = arith.constant 0 : index
    %c0_6 = arith.constant 0 : index
    %6 = vector.load %arg21[%c0_5, %c0_6] : memref<3x16xf32, #tpu.memory_space<vmem>>, vector<3x16xf32>
    %c0_7 = arith.constant 0 : index
    %c0_8 = arith.constant 0 : index
    %7 = vector.load %arg22[%c0_7, %c0_8] : memref<3x16xf32, #tpu.memory_space<vmem>>, vector<3x16xf32>
    %c0_9 = arith.constant 0 : index
    %c0_10 = arith.constant 0 : index
    %8 = vector.load %arg3[%c0_9, %c0_10] : memref<128x224xf32, #tpu.memory_space<vmem>>, vector<128x224xf32>
    %cst_11 = arith.constant dense<0.000000e+00> : vector<16x224xf32>
    %9 = tpu.matmul %5, %8, %cst_11 {dimension_numbers = #tpu.dot_dimension_numbers<[1], [0], [0], [1], [0, 0, 1, 1], [], []>} : vector<16x128xf32>, vector<128x224xf32>, vector<16x224xf32> -> vector<16x224xf32>
    %c0_12 = arith.constant 0 : index
    %c0_13 = arith.constant 0 : index
    %10 = vector.load %arg4[%c0_12, %c0_13] : memref<1x224xf32, #tpu.memory_space<vmem>>, vector<1x224xf32>
    %11 = vector.broadcast %10 : vector<1x224xf32> to vector<16x224xf32>
    %12 = arith.addf %9, %11 : vector<16x224xf32>
    %13 = vector.extract_strided_slice %12 {offsets = [0, 0], sizes = [16, 112], strides = [1, 1]} : vector<16x224xf32> to vector<16x112xf32>
    %14 = math.tanh %13 : vector<16x112xf32>
    %15 = vector.extract_strided_slice %12 {offsets = [0, 112], sizes = [16, 112], strides = [1, 1]} : vector<16x224xf32> to vector<16x112xf32>
    %16 = arith.negf %15 : vector<16x112xf32>
    %17 = math.exp %16 : vector<16x112xf32>
    %cst_14 = arith.constant 1.000000e+00 : f32
    %18 = vector.broadcast %cst_14 : f32 to vector<16x112xf32>
    %19 = arith.addf %18, %17 : vector<16x112xf32>
    %20 = arith.divf %18, %19 : vector<16x112xf32>
    %21 = arith.mulf %14, %20 : vector<16x112xf32>
    %c0_15 = arith.constant 0 : index
    %c0_16 = arith.constant 0 : index
    %22 = vector.load %arg5[%c0_15, %c0_16] : memref<112x112xf32, #tpu.memory_space<vmem>>, vector<112x112xf32>
    %cst_17 = arith.constant dense<0.000000e+00> : vector<16x112xf32>
    %23 = tpu.matmul %21, %22, %cst_17 {dimension_numbers = #tpu.dot_dimension_numbers<[1], [0], [0], [1], [0, 0, 1, 1], [], []>} : vector<16x112xf32>, vector<112x112xf32>, vector<16x112xf32> -> vector<16x112xf32>
    %c0_18 = arith.constant 0 : index
    %c0_19 = arith.constant 0 : index
    %24 = vector.load %arg6[%c0_18, %c0_19] : memref<1x112xf32, #tpu.memory_space<vmem>>, vector<1x112xf32>
    %25 = vector.broadcast %24 : vector<1x112xf32> to vector<16x112xf32>
    %26 = arith.addf %23, %25 : vector<16x112xf32>
    %27 = vector.extract_strided_slice %5 {offsets = [0, 16], sizes = [16, 112], strides = [1, 1]} : vector<16x128xf32> to vector<16x112xf32>
    %28 = arith.addf %21, %27 : vector<16x112xf32>
    %cst_20 = arith.constant dense<0.000000e+00> : vector<112xf32>
    %29 = vector.multi_reduction <add>, %28, %cst_20 [0] : vector<16x112xf32> to vector<112xf32>
    %30 = vector.shape_cast %29 : vector<112xf32> to vector<1x112xf32>
    %cst_21 = arith.constant 1.600000e+01 : f32
    %31 = vector.broadcast %cst_21 : f32 to vector<1x112xf32>
    %32 = arith.divf %30, %31 : vector<1x112xf32>
    %33 = arith.mulf %28, %28 : vector<16x112xf32>
    %cst_22 = arith.constant dense<0.000000e+00> : vector<112xf32>
    %34 = vector.multi_reduction <add>, %33, %cst_22 [0] : vector<16x112xf32> to vector<112xf32>
    %35 = vector.shape_cast %34 : vector<112xf32> to vector<1x112xf32>
    %cst_23 = arith.constant 1.600000e+01 : f32
    %36 = vector.broadcast %cst_23 : f32 to vector<1x112xf32>
    %37 = arith.divf %35, %36 : vector<1x112xf32>
    %c0_24 = arith.constant 0 : index
    %c0_25 = arith.constant 0 : index
    %38 = vector.load %arg7[%c0_24, %c0_25] : memref<112x16xf32, #tpu.memory_space<vmem>>, vector<112x16xf32>
    %cst_26 = arith.constant dense<0.000000e+00> : vector<1x16xf32>
    %39 = tpu.matmul %32, %38, %cst_26 {dimension_numbers = #tpu.dot_dimension_numbers<[1], [0], [0], [1], [0, 0, 1, 1], [], []>} : vector<1x112xf32>, vector<112x16xf32>, vector<1x16xf32> -> vector<1x16xf32>
    %cst_27 = arith.constant 0.142857149 : f32
    %40 = vector.broadcast %cst_27 : f32 to vector<1x16xf32>
    %41 = arith.mulf %39, %40 : vector<1x16xf32>
    %c0_28 = arith.constant 0 : index
    %c0_29 = arith.constant 0 : index
    %42 = vector.load %arg7[%c0_28, %c0_29] : memref<112x16xf32, #tpu.memory_space<vmem>>, vector<112x16xf32>
    %cst_30 = arith.constant dense<0.000000e+00> : vector<1x16xf32>
    %43 = tpu.matmul %37, %42, %cst_30 {dimension_numbers = #tpu.dot_dimension_numbers<[1], [0], [0], [1], [0, 0, 1, 1], [], []>} : vector<1x112xf32>, vector<112x16xf32>, vector<1x16xf32> -> vector<1x16xf32>
    %cst_31 = arith.constant 0.142857149 : f32
    %44 = vector.broadcast %cst_31 : f32 to vector<1x16xf32>
    %45 = arith.mulf %43, %44 : vector<1x16xf32>
    %46 = arith.mulf %41, %41 : vector<1x16xf32>
    %47 = arith.subf %45, %46 : vector<1x16xf32>
    %48 = vector.extract_strided_slice %6 {offsets = [0, 0], sizes = [1, 16], strides = [1, 1]} : vector<3x16xf32> to vector<1x16xf32>
    %cst_32 = arith.constant 9.99999974E-6 : f32
    %49 = vector.broadcast %cst_32 : f32 to vector<1x16xf32>
    %50 = arith.addf %47, %49 : vector<1x16xf32>
    %51 = math.rsqrt %50 : vector<1x16xf32>
    %52 = arith.mulf %48, %51 : vector<1x16xf32>
    %53 = vector.extract_strided_slice %7 {offsets = [0, 0], sizes = [1, 16], strides = [1, 1]} : vector<3x16xf32> to vector<1x16xf32>
    %54 = arith.mulf %41, %52 : vector<1x16xf32>
    %55 = arith.subf %53, %54 : vector<1x16xf32>
    %c0_33 = arith.constant 0 : index
    %c0_34 = arith.constant 0 : index
    %56 = vector.load %arg8[%c0_33, %c0_34] : memref<16x112xf32, #tpu.memory_space<vmem>>, vector<16x112xf32>
    %cst_35 = arith.constant dense<0.000000e+00> : vector<1x112xf32>
    %57 = tpu.matmul %52, %56, %cst_35 {dimension_numbers = #tpu.dot_dimension_numbers<[1], [0], [0], [1], [0, 0, 1, 1], [], []>} : vector<1x16xf32>, vector<16x112xf32>, vector<1x112xf32> -> vector<1x112xf32>
    %c0_36 = arith.constant 0 : index
    %c0_37 = arith.constant 0 : index
    %58 = vector.load %arg8[%c0_36, %c0_37] : memref<16x112xf32, #tpu.memory_space<vmem>>, vector<16x112xf32>
    %cst_38 = arith.constant dense<0.000000e+00> : vector<1x112xf32>
    %59 = tpu.matmul %55, %58, %cst_38 {dimension_numbers = #tpu.dot_dimension_numbers<[1], [0], [0], [1], [0, 0, 1, 1], [], []>} : vector<1x16xf32>, vector<16x112xf32>, vector<1x112xf32> -> vector<1x112xf32>
    %60 = vector.broadcast %57 : vector<1x112xf32> to vector<16x112xf32>
    %61 = arith.mulf %28, %60 : vector<16x112xf32>
    %62 = vector.broadcast %59 : vector<1x112xf32> to vector<16x112xf32>
    %63 = arith.addf %61, %62 : vector<16x112xf32>
    %c0_39 = arith.constant 0 : index
    %c0_40 = arith.constant 0 : index
    %64 = vector.load %arg9[%c0_39, %c0_40] : memref<112x160xf32, #tpu.memory_space<vmem>>, vector<112x160xf32>
    %cst_41 = arith.constant dense<0.000000e+00> : vector<16x160xf32>
    %65 = tpu.matmul %63, %64, %cst_41 {dimension_numbers = #tpu.dot_dimension_numbers<[1], [0], [0], [1], [0, 0, 1, 1], [], []>} : vector<16x112xf32>, vector<112x160xf32>, vector<16x160xf32> -> vector<16x160xf32>
    %c0_42 = arith.constant 0 : index
    %c0_43 = arith.constant 0 : index
    %66 = vector.load %arg10[%c0_42, %c0_43] : memref<1x160xf32, #tpu.memory_space<vmem>>, vector<1x160xf32>
    %67 = vector.broadcast %66 : vector<1x160xf32> to vector<16x160xf32>
    %68 = arith.addf %65, %67 : vector<16x160xf32>
    %69 = vector.extract_strided_slice %68 {offsets = [0, 0], sizes = [16, 80], strides = [1, 1]} : vector<16x160xf32> to vector<16x80xf32>
    %70 = math.tanh %69 : vector<16x80xf32>
    %71 = vector.extract_strided_slice %68 {offsets = [0, 80], sizes = [16, 80], strides = [1, 1]} : vector<16x160xf32> to vector<16x80xf32>
    %72 = arith.negf %71 : vector<16x80xf32>
    %73 = math.exp %72 : vector<16x80xf32>
    %cst_44 = arith.constant 1.000000e+00 : f32
    %74 = vector.broadcast %cst_44 : f32 to vector<16x80xf32>
    %75 = arith.addf %74, %73 : vector<16x80xf32>
    %76 = arith.divf %74, %75 : vector<16x80xf32>
    %77 = arith.mulf %70, %76 : vector<16x80xf32>
    %c0_45 = arith.constant 0 : index
    %c0_46 = arith.constant 0 : index
    %78 = vector.load %arg11[%c0_45, %c0_46] : memref<80x80xf32, #tpu.memory_space<vmem>>, vector<80x80xf32>
    %cst_47 = arith.constant dense<0.000000e+00> : vector<16x80xf32>
    %79 = tpu.matmul %77, %78, %cst_47 {dimension_numbers = #tpu.dot_dimension_numbers<[1], [0], [0], [1], [0, 0, 1, 1], [], []>} : vector<16x80xf32>, vector<80x80xf32>, vector<16x80xf32> -> vector<16x80xf32>
    %c0_48 = arith.constant 0 : index
    %c0_49 = arith.constant 0 : index
    %80 = vector.load %arg12[%c0_48, %c0_49] : memref<1x80xf32, #tpu.memory_space<vmem>>, vector<1x80xf32>
    %81 = vector.broadcast %80 : vector<1x80xf32> to vector<16x80xf32>
    %82 = arith.addf %79, %81 : vector<16x80xf32>
    %83 = vector.extract_strided_slice %26 {offsets = [0, 32], sizes = [16, 80], strides = [1, 1]} : vector<16x112xf32> to vector<16x80xf32>
    %84 = arith.addf %82, %83 : vector<16x80xf32>
    %85 = vector.extract_strided_slice %63 {offsets = [0, 32], sizes = [16, 80], strides = [1, 1]} : vector<16x112xf32> to vector<16x80xf32>
    %86 = arith.addf %77, %85 : vector<16x80xf32>
    %cst_50 = arith.constant dense<0.000000e+00> : vector<80xf32>
    %87 = vector.multi_reduction <add>, %86, %cst_50 [0] : vector<16x80xf32> to vector<80xf32>
    %88 = vector.shape_cast %87 : vector<80xf32> to vector<1x80xf32>
    %cst_51 = arith.constant 1.600000e+01 : f32
    %89 = vector.broadcast %cst_51 : f32 to vector<1x80xf32>
    %90 = arith.divf %88, %89 : vector<1x80xf32>
    %91 = arith.mulf %86, %86 : vector<16x80xf32>
    %cst_52 = arith.constant dense<0.000000e+00> : vector<80xf32>
    %92 = vector.multi_reduction <add>, %91, %cst_52 [0] : vector<16x80xf32> to vector<80xf32>
    %93 = vector.shape_cast %92 : vector<80xf32> to vector<1x80xf32>
    %cst_53 = arith.constant 1.600000e+01 : f32
    %94 = vector.broadcast %cst_53 : f32 to vector<1x80xf32>
    %95 = arith.divf %93, %94 : vector<1x80xf32>
    %c0_54 = arith.constant 0 : index
    %c0_55 = arith.constant 0 : index
    %96 = vector.load %arg13[%c0_54, %c0_55] : memref<80x16xf32, #tpu.memory_space<vmem>>, vector<80x16xf32>
    %cst_56 = arith.constant dense<0.000000e+00> : vector<1x16xf32>
    %97 = tpu.matmul %90, %96, %cst_56 {dimension_numbers = #tpu.dot_dimension_numbers<[1], [0], [0], [1], [0, 0, 1, 1], [], []>} : vector<1x80xf32>, vector<80x16xf32>, vector<1x16xf32> -> vector<1x16xf32>
    %cst_57 = arith.constant 2.000000e-01 : f32
    %98 = vector.broadcast %cst_57 : f32 to vector<1x16xf32>
    %99 = arith.mulf %97, %98 : vector<1x16xf32>
    %c0_58 = arith.constant 0 : index
    %c0_59 = arith.constant 0 : index
    %100 = vector.load %arg13[%c0_58, %c0_59] : memref<80x16xf32, #tpu.memory_space<vmem>>, vector<80x16xf32>
    %cst_60 = arith.constant dense<0.000000e+00> : vector<1x16xf32>
    %101 = tpu.matmul %95, %100, %cst_60 {dimension_numbers = #tpu.dot_dimension_numbers<[1], [0], [0], [1], [0, 0, 1, 1], [], []>} : vector<1x80xf32>, vector<80x16xf32>, vector<1x16xf32> -> vector<1x16xf32>
    %cst_61 = arith.constant 2.000000e-01 : f32
    %102 = vector.broadcast %cst_61 : f32 to vector<1x16xf32>
    %103 = arith.mulf %101, %102 : vector<1x16xf32>
    %104 = arith.mulf %99, %99 : vector<1x16xf32>
    %105 = arith.subf %103, %104 : vector<1x16xf32>
    %106 = vector.extract_strided_slice %6 {offsets = [1, 0], sizes = [1, 16], strides = [1, 1]} : vector<3x16xf32> to vector<1x16xf32>
    %cst_62 = arith.constant 9.99999974E-6 : f32
    %107 = vector.broadcast %cst_62 : f32 to vector<1x16xf32>
    %108 = arith.addf %105, %107 : vector<1x16xf32>
    %109 = math.rsqrt %108 : vector<1x16xf32>
    %110 = arith.mulf %106, %109 : vector<1x16xf32>
    %111 = vector.extract_strided_slice %7 {offsets = [1, 0], sizes = [1, 16], strides = [1, 1]} : vector<3x16xf32> to vector<1x16xf32>
    %112 = arith.mulf %99, %110 : vector<1x16xf32>
    %113 = arith.subf %111, %112 : vector<1x16xf32>
    %c0_63 = arith.constant 0 : index
    %c0_64 = arith.constant 0 : index
    %114 = vector.load %arg14[%c0_63, %c0_64] : memref<16x80xf32, #tpu.memory_space<vmem>>, vector<16x80xf32>
    %cst_65 = arith.constant dense<0.000000e+00> : vector<1x80xf32>
    %115 = tpu.matmul %110, %114, %cst_65 {dimension_numbers = #tpu.dot_dimension_numbers<[1], [0], [0], [1], [0, 0, 1, 1], [], []>} : vector<1x16xf32>, vector<16x80xf32>, vector<1x80xf32> -> vector<1x80xf32>
    %c0_66 = arith.constant 0 : index
    %c0_67 = arith.constant 0 : index
    %116 = vector.load %arg14[%c0_66, %c0_67] : memref<16x80xf32, #tpu.memory_space<vmem>>, vector<16x80xf32>
    %cst_68 = arith.constant dense<0.000000e+00> : vector<1x80xf32>
    %117 = tpu.matmul %113, %116, %cst_68 {dimension_numbers = #tpu.dot_dimension_numbers<[1], [0], [0], [1], [0, 0, 1, 1], [], []>} : vector<1x16xf32>, vector<16x80xf32>, vector<1x80xf32> -> vector<1x80xf32>
    %118 = vector.broadcast %115 : vector<1x80xf32> to vector<16x80xf32>
    %119 = arith.mulf %86, %118 : vector<16x80xf32>
    %120 = vector.broadcast %117 : vector<1x80xf32> to vector<16x80xf32>
    %121 = arith.addf %119, %120 : vector<16x80xf32>
    %c0_69 = arith.constant 0 : index
    %c0_70 = arith.constant 0 : index
    %122 = vector.load %arg15[%c0_69, %c0_70] : memref<80x32xf32, #tpu.memory_space<vmem>>, vector<80x32xf32>
    %cst_71 = arith.constant dense<0.000000e+00> : vector<16x32xf32>
    %123 = tpu.matmul %121, %122, %cst_71 {dimension_numbers = #tpu.dot_dimension_numbers<[1], [0], [0], [1], [0, 0, 1, 1], [], []>} : vector<16x80xf32>, vector<80x32xf32>, vector<16x32xf32> -> vector<16x32xf32>
    %c0_72 = arith.constant 0 : index
    %c0_73 = arith.constant 0 : index
    %124 = vector.load %arg16[%c0_72, %c0_73] : memref<1x32xf32, #tpu.memory_space<vmem>>, vector<1x32xf32>
    %125 = vector.broadcast %124 : vector<1x32xf32> to vector<16x32xf32>
    %126 = arith.addf %123, %125 : vector<16x32xf32>
    %127 = vector.extract_strided_slice %126 {offsets = [0, 0], sizes = [16, 16], strides = [1, 1]} : vector<16x32xf32> to vector<16x16xf32>
    %128 = math.tanh %127 : vector<16x16xf32>
    %129 = vector.extract_strided_slice %126 {offsets = [0, 16], sizes = [16, 16], strides = [1, 1]} : vector<16x32xf32> to vector<16x16xf32>
    %130 = arith.negf %129 : vector<16x16xf32>
    %131 = math.exp %130 : vector<16x16xf32>
    %cst_74 = arith.constant 1.000000e+00 : f32
    %132 = vector.broadcast %cst_74 : f32 to vector<16x16xf32>
    %133 = arith.addf %132, %131 : vector<16x16xf32>
    %134 = arith.divf %132, %133 : vector<16x16xf32>
    %135 = arith.mulf %128, %134 : vector<16x16xf32>
    %c0_75 = arith.constant 0 : index
    %c0_76 = arith.constant 0 : index
    %136 = vector.load %arg17[%c0_75, %c0_76] : memref<16x16xf32, #tpu.memory_space<vmem>>, vector<16x16xf32>
    %cst_77 = arith.constant dense<0.000000e+00> : vector<16x16xf32>
    %137 = tpu.matmul %135, %136, %cst_77 {dimension_numbers = #tpu.dot_dimension_numbers<[1], [0], [0], [1], [0, 0, 1, 1], [], []>} : vector<16x16xf32>, vector<16x16xf32>, vector<16x16xf32> -> vector<16x16xf32>
    %c0_78 = arith.constant 0 : index
    %c0_79 = arith.constant 0 : index
    %138 = vector.load %arg18[%c0_78, %c0_79] : memref<1x16xf32, #tpu.memory_space<vmem>>, vector<1x16xf32>
    %139 = vector.broadcast %138 : vector<1x16xf32> to vector<16x16xf32>
    %140 = arith.addf %137, %139 : vector<16x16xf32>
    %141 = vector.extract_strided_slice %84 {offsets = [0, 64], sizes = [16, 16], strides = [1, 1]} : vector<16x80xf32> to vector<16x16xf32>
    %142 = arith.addf %140, %141 : vector<16x16xf32>
    %c0_80 = arith.constant 0 : index
    %c0_81 = arith.constant 0 : index
    %143 = vector.load %arg23[%c0_80, %c0_81] : memref<8x10xf32, #tpu.memory_space<vmem>>, vector<8x10xf32>
    %c0_82 = arith.constant 0 : index
    %c0_83 = arith.constant 0 : index
    %144 = vector.load %arg24[%c0_82, %c0_83] : memref<10x8xf32, #tpu.memory_space<vmem>>, vector<10x8xf32>
    %cst_84 = arith.constant dense<0.000000e+00> : vector<8x8xf32>
    %145 = tpu.matmul %143, %144, %cst_84 {dimension_numbers = #tpu.dot_dimension_numbers<[1], [0], [0], [1], [0, 0, 1, 1], [], []>} : vector<8x10xf32>, vector<10x8xf32>, vector<8x8xf32> -> vector<8x8xf32>
    %cst_85 = arith.constant 0.000000e+00 : f32
    %146 = vector.broadcast %cst_85 : f32 to vector<8x8xf32>
    %147 = arith.maximumf %145, %146 : vector<8x8xf32>
    %cst_86 = arith.constant dense<0xFF800000> : vector<8xf32>
    %148 = vector.multi_reduction <maximumf>, %147, %cst_86 [0] : vector<8x8xf32> to vector<8xf32>
    %149 = vector.shape_cast %148 : vector<8xf32> to vector<1x8xf32>
    %150 = vector.broadcast %149 : vector<1x8xf32> to vector<8x8xf32>
    %151 = arith.subf %147, %150 : vector<8x8xf32>
    %152 = math.exp %151 : vector<8x8xf32>
    %cst_87 = arith.constant dense<0.000000e+00> : vector<8xf32>
    %153 = vector.multi_reduction <add>, %152, %cst_87 [0] : vector<8x8xf32> to vector<8xf32>
    %154 = vector.shape_cast %153 : vector<8xf32> to vector<1x8xf32>
    %155 = vector.broadcast %154 : vector<1x8xf32> to vector<8x8xf32>
    %156 = arith.divf %152, %155 : vector<8x8xf32>
    %157 = vector.extract_strided_slice %142 {offsets = [0, 0], sizes = [8, 16], strides = [1, 1]} : vector<16x16xf32> to vector<8x16xf32>
    %cst_88 = arith.constant dense<0.000000e+00> : vector<8x16xf32>
    %158 = tpu.matmul %156, %157, %cst_88 {dimension_numbers = #tpu.dot_dimension_numbers<[1], [0], [0], [1], [0, 0, 1, 1], [], []>} : vector<8x8xf32>, vector<8x16xf32>, vector<8x16xf32> -> vector<8x16xf32>
    %cst_89 = arith.constant dense<0.000000e+00> : vector<8x16xf32>
    %159 = tpu.matmul %156, %158, %cst_89 {dimension_numbers = #tpu.dot_dimension_numbers<[1], [0], [0], [1], [0, 0, 1, 1], [], []>} : vector<8x8xf32>, vector<8x16xf32>, vector<8x16xf32> -> vector<8x16xf32>
    %160 = tpu.concatenate %157, %158, %159 in 1 : vector<8x16xf32>, vector<8x16xf32>, vector<8x16xf32> -> vector<8x48xf32>
    %161 = vector.extract_strided_slice %142 {offsets = [8, 0], sizes = [8, 16], strides = [1, 1]} : vector<16x16xf32> to vector<8x16xf32>
    %cst_90 = arith.constant dense<0.000000e+00> : vector<8x16xf32>
    %162 = tpu.matmul %156, %161, %cst_90 {dimension_numbers = #tpu.dot_dimension_numbers<[1], [0], [0], [1], [0, 0, 1, 1], [], []>} : vector<8x8xf32>, vector<8x16xf32>, vector<8x16xf32> -> vector<8x16xf32>
    %cst_91 = arith.constant dense<0.000000e+00> : vector<8x16xf32>
    %163 = tpu.matmul %156, %162, %cst_91 {dimension_numbers = #tpu.dot_dimension_numbers<[1], [0], [0], [1], [0, 0, 1, 1], [], []>} : vector<8x8xf32>, vector<8x16xf32>, vector<8x16xf32> -> vector<8x16xf32>
    %164 = tpu.concatenate %161, %162, %163 in 1 : vector<8x16xf32>, vector<8x16xf32>, vector<8x16xf32> -> vector<8x48xf32>
    %165 = tpu.concatenate %160, %164 in 0 : vector<8x48xf32>, vector<8x48xf32> -> vector<16x48xf32>
    %c0_92 = arith.constant 0 : index
    %c0_93 = arith.constant 0 : index
    %166 = vector.load %arg25[%c0_92, %c0_93] : memref<48x16xf32, #tpu.memory_space<vmem>>, vector<48x16xf32>
    %cst_94 = arith.constant dense<0.000000e+00> : vector<16x16xf32>
    %167 = tpu.matmul %165, %166, %cst_94 {dimension_numbers = #tpu.dot_dimension_numbers<[1], [0], [0], [1], [0, 0, 1, 1], [], []>} : vector<16x48xf32>, vector<48x16xf32>, vector<16x16xf32> -> vector<16x16xf32>
    %c0_95 = arith.constant 0 : index
    %c0_96 = arith.constant 0 : index
    %168 = vector.load %arg26[%c0_95, %c0_96] : memref<1x16xf32, #tpu.memory_space<vmem>>, vector<1x16xf32>
    %169 = vector.broadcast %168 : vector<1x16xf32> to vector<16x16xf32>
    %170 = arith.addf %167, %169 : vector<16x16xf32>
    %cst_97 = arith.constant 0.000000e+00 : f32
    %171 = vector.broadcast %cst_97 : f32 to vector<16x16xf32>
    %172 = arith.maximumf %170, %171 : vector<16x16xf32>
    %c0_98 = arith.constant 0 : index
    %c0_99 = arith.constant 0 : index
    %173 = vector.load %arg28[%c0_98, %c0_99] : memref<16x16xf32, #tpu.memory_space<vmem>>, vector<16x16xf32>
    %cst_100 = arith.constant dense<0.000000e+00> : vector<16x16xf32>
    %174 = tpu.matmul %172, %173, %cst_100 {dimension_numbers = #tpu.dot_dimension_numbers<[1], [0], [0], [1], [0, 0, 1, 1], [], []>} : vector<16x16xf32>, vector<16x16xf32>, vector<16x16xf32> -> vector<16x16xf32>
    %c0_101 = arith.constant 0 : index
    %c0_102 = arith.constant 0 : index
    %175 = vector.load %arg27[%c0_101, %c0_102] : memref<1x16xf32, #tpu.memory_space<vmem>>, vector<1x16xf32>
    %176 = vector.broadcast %175 : vector<1x16xf32> to vector<16x16xf32>
    %177 = arith.addf %174, %176 : vector<16x16xf32>
    %cst_103 = arith.constant 0.000000e+00 : f32
    %178 = vector.broadcast %cst_103 : f32 to vector<16x16xf32>
    %179 = arith.maximumf %177, %178 : vector<16x16xf32>
    %c0_104 = arith.constant 0 : index
    %c0_105 = arith.constant 0 : index
    %180 = vector.load %arg29[%c0_104, %c0_105] : memref<1x16xf32, #tpu.memory_space<vmem>>, vector<1x16xf32>
    %181 = vector.broadcast %180 : vector<1x16xf32> to vector<16x16xf32>
    %182 = arith.mulf %179, %181 : vector<16x16xf32>
    %cst_106 = arith.constant dense<0.000000e+00> : vector<16xf32>
    %183 = vector.multi_reduction <add>, %182, %cst_106 [1] : vector<16x16xf32> to vector<16xf32>
    %184 = vector.shape_cast %183 : vector<16xf32> to vector<16x1xf32>
    %c0_107 = arith.constant 0 : index
    %c0_108 = arith.constant 0 : index
    %185 = vector.load %arg30[%c0_107, %c0_108] : memref<1x1xf32, #tpu.memory_space<vmem>>, vector<1x1xf32>
    %186 = vector.broadcast %185 : vector<1x1xf32> to vector<16x1xf32>
    %187 = arith.addf %184, %186 : vector<16x1xf32>
    %188 = arith.negf %187 : vector<16x1xf32>
    %189 = math.exp %188 : vector<16x1xf32>
    %cst_109 = arith.constant 1.000000e+00 : f32
    %190 = vector.broadcast %cst_109 : f32 to vector<16x1xf32>
    %191 = arith.addf %190, %189 : vector<16x1xf32>
    %192 = arith.divf %190, %191 : vector<16x1xf32>
    %c0_110 = arith.constant 0 : index
    %c0_111 = arith.constant 0 : index
    %193 = vector.load %arg32[%c0_110, %c0_111] : memref<16x16xf32, #tpu.memory_space<vmem>>, vector<16x16xf32>
    %cst_112 = arith.constant dense<0.000000e+00> : vector<16x16xf32>
    %194 = tpu.matmul %172, %193, %cst_112 {dimension_numbers = #tpu.dot_dimension_numbers<[1], [0], [0], [1], [0, 0, 1, 1], [], []>} : vector<16x16xf32>, vector<16x16xf32>, vector<16x16xf32> -> vector<16x16xf32>
    %c0_113 = arith.constant 0 : index
    %c0_114 = arith.constant 0 : index
    %195 = vector.load %arg31[%c0_113, %c0_114] : memref<1x16xf32, #tpu.memory_space<vmem>>, vector<1x16xf32>
    %196 = vector.broadcast %195 : vector<1x16xf32> to vector<16x16xf32>
    %197 = arith.addf %194, %196 : vector<16x16xf32>
    %cst_115 = arith.constant 0.000000e+00 : f32
    %198 = vector.broadcast %cst_115 : f32 to vector<16x16xf32>
    %199 = arith.maximumf %197, %198 : vector<16x16xf32>
    %c0_116 = arith.constant 0 : index
    %c0_117 = arith.constant 0 : index
    %200 = vector.load %arg33[%c0_116, %c0_117] : memref<1x16xf32, #tpu.memory_space<vmem>>, vector<1x16xf32>
    %201 = vector.broadcast %200 : vector<1x16xf32> to vector<16x16xf32>
    %202 = arith.mulf %199, %201 : vector<16x16xf32>
    %cst_118 = arith.constant dense<0.000000e+00> : vector<16xf32>
    %203 = vector.multi_reduction <add>, %202, %cst_118 [1] : vector<16x16xf32> to vector<16xf32>
    %204 = vector.shape_cast %203 : vector<16xf32> to vector<16x1xf32>
    %c0_119 = arith.constant 0 : index
    %c0_120 = arith.constant 0 : index
    %205 = vector.load %arg34[%c0_119, %c0_120] : memref<1x1xf32, #tpu.memory_space<vmem>>, vector<1x1xf32>
    %206 = vector.broadcast %205 : vector<1x1xf32> to vector<16x1xf32>
    %207 = arith.addf %204, %206 : vector<16x1xf32>
    %208 = arith.negf %207 : vector<16x1xf32>
    %209 = math.exp %208 : vector<16x1xf32>
    %cst_121 = arith.constant 1.000000e+00 : f32
    %210 = vector.broadcast %cst_121 : f32 to vector<16x1xf32>
    %211 = arith.addf %210, %209 : vector<16x1xf32>
    %212 = arith.divf %210, %211 : vector<16x1xf32>
    %c0_122 = arith.constant 0 : index
    %c0_123 = arith.constant 0 : index
    %213 = vector.load %arg35[%c0_122, %c0_123] : memref<16x1xf32, #tpu.memory_space<vmem>>, vector<16x1xf32>
    %cst_124 = arith.constant 0.000000e+00 : f32
    %214 = vector.broadcast %cst_124 : f32 to vector<16x1xf32>
    %215 = arith.cmpf ogt, %213, %214 : vector<16x1xf32>
    %216 = arith.select %215, %192, %212 : vector<16x1xi1>, vector<16x1xf32>
    %c0_125 = arith.constant 0 : index
    %c0_126 = arith.constant 0 : index
    %217 = vector.load %arg36[%c0_125, %c0_126] : memref<16x1xf32, #tpu.memory_space<vmem>>, vector<16x1xf32>
    %218 = math.log %216 : vector<16x1xf32>
    %cst_127 = arith.constant -1.000000e+02 : f32
    %219 = vector.broadcast %cst_127 : f32 to vector<16x1xf32>
    %220 = arith.maximumf %218, %219 : vector<16x1xf32>
    %cst_128 = arith.constant 1.000000e+00 : f32
    %221 = vector.broadcast %cst_128 : f32 to vector<16x1xf32>
    %222 = arith.subf %221, %216 : vector<16x1xf32>
    %223 = math.log %222 : vector<16x1xf32>
    %cst_129 = arith.constant -1.000000e+02 : f32
    %224 = vector.broadcast %cst_129 : f32 to vector<16x1xf32>
    %225 = arith.maximumf %223, %224 : vector<16x1xf32>
    %226 = arith.mulf %217, %220 : vector<16x1xf32>
    %cst_130 = arith.constant 1.000000e+00 : f32
    %227 = vector.broadcast %cst_130 : f32 to vector<16x1xf32>
    %228 = arith.subf %227, %217 : vector<16x1xf32>
    %229 = arith.mulf %228, %225 : vector<16x1xf32>
    %230 = arith.addf %226, %229 : vector<16x1xf32>
    %cst_131 = arith.constant 0.000000e+00 : f32
    %231 = vector.broadcast %cst_131 : f32 to vector<16x1xf32>
    %232 = arith.subf %231, %230 : vector<16x1xf32>
    %cst_132 = arith.constant dense<0.000000e+00> : vector<1xf32>
    %233 = vector.multi_reduction <add>, %232, %cst_132 [0] : vector<16x1xf32> to vector<1xf32>
    %234 = vector.shape_cast %233 : vector<1xf32> to vector<1x1xf32>
    %cst_133 = arith.constant 1.600000e+01 : f32
    %235 = vector.broadcast %cst_133 : f32 to vector<1x1xf32>
    %236 = arith.divf %234, %235 : vector<1x1xf32>
    %cst_134 = arith.constant 0.000000e+00 : f32
    %237 = vector.broadcast %cst_134 : f32 to vector<16x1xf32>
    %238 = arith.cmpf ogt, %213, %237 : vector<16x1xf32>
    %239 = arith.extui %238 : vector<16x1xi1> to vector<16x1xi32>
    %240 = arith.sitofp %239 : vector<16x1xi32> to vector<16x1xf32>
    %cst_135 = arith.constant 1.000000e+00 : f32
    %241 = vector.broadcast %cst_135 : f32 to vector<16x1xf32>
    %242 = arith.subf %241, %240 : vector<16x1xf32>
    %cst_136 = arith.constant dense<0.000000e+00> : vector<1xf32>
    %243 = vector.multi_reduction <add>, %240, %cst_136 [0] : vector<16x1xf32> to vector<1xf32>
    %244 = vector.shape_cast %243 : vector<1xf32> to vector<1x1xf32>
    %cst_137 = arith.constant 1.000000e+00 : f32
    %245 = vector.broadcast %cst_137 : f32 to vector<1x1xf32>
    %246 = arith.maximumf %244, %245 : vector<1x1xf32>
    %cst_138 = arith.constant dense<0.000000e+00> : vector<1xf32>
    %247 = vector.multi_reduction <add>, %242, %cst_138 [0] : vector<16x1xf32> to vector<1xf32>
    %248 = vector.shape_cast %247 : vector<1xf32> to vector<1x1xf32>
    %cst_139 = arith.constant 1.000000e+00 : f32
    %249 = vector.broadcast %cst_139 : f32 to vector<1x1xf32>
    %250 = arith.maximumf %248, %249 : vector<1x1xf32>
    %251 = vector.broadcast %240 : vector<16x1xf32> to vector<16x16xf32>
    %252 = arith.mulf %172, %251 : vector<16x16xf32>
    %cst_140 = arith.constant dense<0.000000e+00> : vector<16xf32>
    %253 = vector.multi_reduction <add>, %252, %cst_140 [0] : vector<16x16xf32> to vector<16xf32>
    %254 = vector.shape_cast %253 : vector<16xf32> to vector<1x16xf32>
    %255 = vector.broadcast %246 : vector<1x1xf32> to vector<1x16xf32>
    %256 = arith.divf %254, %255 : vector<1x16xf32>
    %257 = vector.broadcast %242 : vector<16x1xf32> to vector<16x16xf32>
    %258 = arith.mulf %172, %257 : vector<16x16xf32>
    %cst_141 = arith.constant dense<0.000000e+00> : vector<16xf32>
    %259 = vector.multi_reduction <add>, %258, %cst_141 [0] : vector<16x16xf32> to vector<16xf32>
    %260 = vector.shape_cast %259 : vector<16xf32> to vector<1x16xf32>
    %261 = vector.broadcast %250 : vector<1x1xf32> to vector<1x16xf32>
    %262 = arith.divf %260, %261 : vector<1x16xf32>
    %cst_142 = arith.constant 1.000000e+00 : f32
    %263 = vector.broadcast %cst_142 : f32 to vector<1x16xf32>
    %264 = arith.mulf %263, %256 : vector<1x16xf32>
    %cst_143 = arith.constant 1.000000e+00 : f32
    %265 = vector.broadcast %cst_143 : f32 to vector<1x16xf32>
    %266 = arith.mulf %265, %262 : vector<1x16xf32>
    %267 = arith.subf %264, %266 : vector<1x16xf32>
    %268 = arith.mulf %267, %267 : vector<1x16xf32>
    %cst_144 = arith.constant dense<0.000000e+00> : vector<1xf32>
    %269 = vector.multi_reduction <add>, %268, %cst_144 [1] : vector<1x16xf32> to vector<1xf32>
    %270 = vector.shape_cast %269 : vector<1xf32> to vector<1x1xf32>
    %c0_145 = arith.constant 0 : index
    %c0_146 = arith.constant 0 : index
    %271 = vector.load %arg37[%c0_145, %c0_146] : memref<1x1xf32, #tpu.memory_space<vmem>>, vector<1x1xf32>
    %272 = arith.addf %270, %271 : vector<1x1xf32>
    %cst_147 = arith.constant 5.000000e-01 : f32
    %273 = vector.broadcast %cst_147 : f32 to vector<1x1xf32>
    %274 = arith.mulf %273, %272 : vector<1x1xf32>
    %275 = arith.addf %236, %274 : vector<1x1xf32>
    %c0_148 = arith.constant 0 : index
    %c0_149 = arith.constant 0 : index
    %276 = vector.load %arg39[%c0_148, %c0_149] : memref<1x1xf32, #tpu.memory_space<vmem>>, vector<1x1xf32>
    tpu.vector_store %arg39[%c0_148, %c0_149], %275 {strides = array<i32>} : memref<1x1xf32, #tpu.memory_space<vmem>>, vector<1x1xf32>,
    %277 = tpu.concatenate %216, %212, %192 in 1 : vector<16x1xf32>, vector<16x1xf32>, vector<16x1xf32> -> vector<16x3xf32>
    %c0_150 = arith.constant 0 : index
    %c0_151 = arith.constant 0 : index
    %278 = vector.load %arg38[%c0_150, %c0_151] : memref<16x3xf32, #tpu.memory_space<vmem>>, vector<16x3xf32>
    tpu.vector_store %arg38[%c0_150, %c0_151], %277 {strides = array<i32>} : memref<16x3xf32, #tpu.memory_space<vmem>>, vector<16x3xf32>,
    return
  }
}

</mosaic_0001>

<bundles_post_ra>
// kernel: cape_cau_forward.1
= control target key start
LH: loop header
LB: loop body
LE: loop exit
PB: predicated region body
PF: predicated region fallthrough
CT: control target
= control target key end

     0   :  { %s3631_s6 = smov 1   ;;  %s3632_s10 = smov 2   ;;  %s4332_s0 = inlined_call_operand.smem [shape: u32[40], index: -1, kind: input, shape index: {}] }
   0x1   :  { %s3690_s5 = sld [smem:[%s4332_s0]]   ;;  %s3633_s14 = smov 3  }
   0x2   :  { %s3695_s9 = sld [smem:[%s4332_s0 + %s3631_s6]]   ;;  %s3634_s18 = smov 4  }
   0x3   :  { %s3700_s13 = sld [smem:[%s4332_s0 + %s3632_s10]]   ;;  %s3635_s22 = smov 5  }
   0x4   :  { %s3705_s17 = sld [smem:[%s4332_s0 + %s3633_s14]]   ;;  %s3636_s26 = smov 6  }
   0x5   :  { %s3710_s21 = sld [smem:[%s4332_s0 + %s3634_s18]]   ;;  %s3637_s30 = smov 7  }
   0x6   :  { %s3715_s25 = sld [smem:[%s4332_s0 + %s3635_s22]]   ;;  %s3638_s4 = smov 8  }
   0x7   :  { %s3720_s29 = sld [smem:[%s4332_s0 + %s3636_s26]]   ;;  %s3639_s10 = smov 9  }
   0x8   :  { %s3725_s3 = sld [smem:[%s4332_s0 + %s3637_s30]]   ;;  %s3640_s15 = smov 10  }
   0x9   :  { %s3730_s8 = sld [smem:[%s4332_s0 + %s3638_s4]]   ;;  %s3641_s20 = smov 11  }
   0xa   :  { %s3735_s14 = sld [smem:[%s4332_s0 + %s3639_s10]]   ;;  %s3642_s26 = smov 12  }
   0xb   :  { %s3740_s19 = sld [smem:[%s4332_s0 + %s3640_s15]]   ;;  %s3643_s1 = smov 13  }
   0xc   :  { %s3745_s24 = sld [smem:[%s4332_s0 + %s3641_s20]]   ;;  %s3644_s7 = smov 14  }
   0xd   :  { %4342 = sst [smem:[#allocation8_spill]] %s3720_s29  ;;  %s3645_s15 = smov 15  }
   0xe   :  { %s3750_s30 = sld [smem:[%s4332_s0 + %s3642_s26]]   ;;  %s3646_s22 = smov 16  }
   0xf   :  { %s3755_s6 = sld [smem:[%s4332_s0 + %s3643_s1]]   ;;  %s3647_s28 = smov 17  }
  0x10   :  { %s3760_s12 = sld [smem:[%s4332_s0 + %s3644_s7]]   ;;  %s3648_s7 = smov 18  }
  0x11   :  { %s3765_s20 = sld [smem:[%s4332_s0 + %s3645_s15]]   ;;  %s3649_s15 = smov 21  }
  0x12   :  { %s3770_s27 = sld [smem:[%s4332_s0 + %s3646_s22]]   ;;  %s3650_s22 = smov 22  }
  0x13   :  { %s3775_s4 = sld [smem:[%s4332_s0 + %s3647_s28]]   ;;  %s3651_s28 = smov 23  }
  0x14   :  { %4343 = sst [smem:[#allocation9_spill]] %s3750_s30  ;;  %s3659_s1 = smov 31  }
  0x15   :  { %4344 = sst [smem:[#allocation10_spill]] %s3755_s6  ;;  %s3660_s10 = smov 32  }
  0x16   :  { %4345 = sst [smem:[#allocation11_spill]] %s3760_s12  ;;  %s3661_s16 = smov 33  }
  0x17   :  { %4346 = sst [smem:[#allocation12_spill]] %s3765_s20  ;;  %s3662_s23 = smov 35  }
  0x18   :  { %4347 = sst [smem:[#allocation13_spill]] %s3770_s27 }
  0x19   :  { %4348 = sst [smem:[#allocation14_spill]] %s3775_s4 }
  0x1a   :  { %s3780_s30 = sld [smem:[%s4332_s0 + %s3648_s7]]   ;;  %s3652_s7 = smov 24  }
  0x1b   :  { %s3785_s29 = sld [smem:[%s4332_s0 + %s3649_s15]]   ;;  %s3653_s15 = smov 25  }
  0x1c   :  { %s3790_s27 = sld [smem:[%s4332_s0 + %s3650_s22]]   ;;  %s3654_s22 = smov 26  }
  0x1d   :  { %s3795_s4 = sld [smem:[%s4332_s0 + %s3651_s28]]   ;;  %s3655_s28 = smov 27  }
  0x1e   :  { %s3805_s20 = sld [smem:[%s4332_s0 + %s3653_s15]]   ;;  %s3657_s15 = smov 29  }
  0x1f   :  { %s3810_s12 = sld [smem:[%s4332_s0 + %s3654_s22]]   ;;  %s3658_s22 = smov 30  }
  0x20   :  { %4349 = sst [smem:[#allocation15_spill]] %s3780_s30 }
  0x21   :  { %s3800_s30 = sld [smem:[%s4332_s0 + %s3652_s7]]   ;;  %s3656_s7 = smov 28  }
  0x22   :  { %s3848_s6 = sld [smem:[%s4332_s0 + %s3662_s23]]   ;;  %s3666_s23 = smov 34  }
  0x23   :  { %4350 = sst [smem:[#allocation16_spill]] %s3795_s4 }
  0x24   :  { %4352 = sst [smem:[#allocation18_spill]] %s3805_s20 }
  0x25   :  { %4353 = sst [smem:[#allocation19_spill]] %s3810_s12 }
  0x26   :  { %s3815_s4 = sld [smem:[%s4332_s0 + %s3655_s28]]   ;;  %s3667_s28 = smov 37  }
  0x27   :  { %4351 = sst [smem:[#allocation17_spill]] %s3800_s30 }
  0x28   :  { %s3820_s30 = sld [smem:[%s4332_s0 + %s3656_s7]]  }
  0x29   :  { %s3825_s20 = sld [smem:[%s4332_s0 + %s3657_s15]]  }
  0x2a   :  { %s2715_s12 = sld [smem:[%s4332_s0 + %s3658_s22]]  }
  0x2b   :  { %s2722_s7 = sld [smem:[%s4332_s0 + %s3667_s28]]  }
  0x2c   :  { %4354 = sst [smem:[#allocation20_spill]] %s3815_s4 }
  0x2d   :  { %s3833_s4 = sld [smem:[%s4332_s0 + %s3659_s1]]   ;;  %s3663_s1 = smov 36  }
  0x2e   :  { %4355 = sst [smem:[#allocation21_spill]] %s3820_s30 }
  0x2f   :  { %4356 = sst [smem:[#allocation22_spill]] %s3825_s20 }
  0x30   :  { %s3838_s30 = sld [smem:[%s4332_s0 + %s3660_s10]]   ;;  %s3664_s10 = smov 38   ;;  %v85_v0 = vstv %s2715_s12 }
  0x31   :  { %s3843_s20 = sld [smem:[%s4332_s0 + %s3661_s16]]   ;;  %s3665_s16 = smov 39   ;;  %86 = vst [vmem:[#allocation2] sm:$0x1] %v85_v0  ;;  %v89_v2 = vstv %s2722_s7 }
  0x32   :  { %s3863_s22 = sld [smem:[%s4332_s0 + %s3665_s16]]   ;;  %90 = vst [vmem:[#allocation4] sm:$0x1] %v89_v2 }
  0x33   :  { %4357 = sst [smem:[#allocation23_spill]] %s3833_s4 }
  0x34   :  { %s3853_s4 = sld [smem:[%s4332_s0 + %s3663_s1]]  }
  0x35   :  { %s2719_s1 = sld [smem:[%s4332_s0 + %s3666_s23]]  }
  0x36   :  { %4358 = sst [smem:[#allocation24_spill]] %s3838_s30 }
  0x37   :  { %4359 = sst [smem:[#allocation25_spill]] %s3843_s20 }
  0x38   :  { %s3858_s30 = sld [smem:[%s4332_s0 + %s3664_s10]]  }
  0x3a   :  { %4360 = sst [smem:[#allocation26_spill]] %s3853_s4 }
  0x3b   :  { %v87_v1 = vstv %s2719_s1 }
  0x3c   :  { %88 = vst [vmem:[#allocation3] sm:$0x1] %v87_v1 }
  0x3d   :  { %v170_v3 = vld [vmem:[%s3695_s9] sm:$0xff]  ;;  %v171_v4 = vld [vmem:[%s3695_s9 + $0x8] sm:$0xff]  ;;  %v172_v5 = vld [vmem:[%s3695_s9 + $0x10] sm:$0xff]  ;;  %vm181_vm0 = vcmask 261120  }
  0x3e   :  { %v3213_v6 = vpack.c.bf16 %v171_v4, %v170_v3  ;;  %v173_v7 = vld [vmem:[%s3695_s9 + $0x18] sm:$0xff]  ;;  %v168_v8 = vld [vmem:[%s3690_s5] sm:$0xff]  ;;  %v266_v10 = vld [vmem:[%s3705_s17 + $0x8] sm:$0xff] }
  0x3f   :  { %v3217_v9 = vpack.c.bf16 %v173_v7, %v172_v5  ;;  %2934 = vmatprep.mubr.msk.f32.mxu0 %vm181_vm0, %v168_v8  ;;  %v268_v11 = vld [vmem:[%s3705_s17 + $0x18] sm:$0xff]  ;;  %v265_v12 = vld [vmem:[%s3705_s17] sm:$0xff]  ;;  %v267_v14 = vld [vmem:[%s3705_s17 + $0x10] sm:$0xff] }
  0x40   :  { %3214 = vmatprep.subr.bf16.mxu0 %v3213_v6  ;;  %v3221_v13 = vpack.c.bf16 %v268_v11, %v266_v10  ;;  %v270_v15 = vld [vmem:[%s3705_s17 + $0x28] sm:$0xff]  ;;  %v272_v16 = vld [vmem:[%s3705_s17 + $0x38] sm:$0xff]  ;;  %v3223_v17 = vpack.c.bf16 %v267_v14, %v265_v12  ;;  %v269_v19 = vld [vmem:[%s3705_s17 + $0x20] sm:$0xff] }
  0x41   :  { %3216 = vmatpush3.bf16.msra.mxu0 %v3213_v6  ;;  %v3225_v18 = vpack.c.bf16 %v272_v16, %v270_v15  ;;  %v271_v20 = vld [vmem:[%s3705_s17 + $0x30] sm:$0xff]  ;;  %v274_v21 = vld [vmem:[%s3705_s17 + $0x48] sm:$0xff]  ;;  %v276_v22 = vld [vmem:[%s3705_s17 + $0x58] sm:$0xff] }
  0x42   :  { %3218 = vmatprep.subr.bf16.mxu0 %v3217_v9  ;;  %3222 = vmatprep.subr.bf16.mxu1 %v3221_v13  ;;  %v3227_v23 = vpack.c.bf16 %v271_v20, %v269_v19  ;;  %v3229_v24 = vpack.c.bf16 %v276_v22, %v274_v21  ;;  %v273_v25 = vld [vmem:[%s3705_s17 + $0x40] sm:$0xff]  ;;  %v275_v26 = vld [vmem:[%s3705_s17 + $0x50] sm:$0xff]  ;;  %v169_v27 = vld [vmem:[%s3690_s5 + $0x8] sm:$0xff] }
  0x43   :  { %3224 = vmatpush1.bf16.msra.mxu1 %v3223_v17  ;;  %v278_v28 = vld [vmem:[%s3705_s17 + $0x68] sm:$0xff]  ;;  %v280_v29 = vld [vmem:[%s3705_s17 + $0x78] sm:$0xff]  ;;  %v3231_v30 = vpack.c.bf16 %v275_v26, %v273_v25  ;;  %v277_v32 = vld [vmem:[%s3705_s17 + $0x60] sm:$0xff] }
  0x44   :  { %3226 = vmatprep.subr.bf16.mxu1 %v3225_v18  ;;  %v3233_v31 = vpack.c.bf16 %v280_v29, %v278_v28  ;;  %v279_v33 = vld [vmem:[%s3705_s17 + $0x70] sm:$0xff] }
  0x45   :  { %3220 = vmatpush3.bf16.msra.mxu0 %v3217_v9 }
  0x47   :  { %3228 = vmatpush1.bf16.msra.mxu1 %v3227_v23 }
  0x48   :  { %2935 = vmatmul.mubr.msk.f32.vlgmr.msra.gmra.mrb[0].mxu0 %vm181_vm0, %v169_v27  ;;  %3230 = vmatprep.subr.bf16.mxu1 %v3229_v24 }
  0x49   :  { %91 = vsyncpa [#allocation6], 0  ;;  %v282_v34 = vld [vmem:[%s3705_s17 + $0x88] sm:$0xff]  ;;  %v284_v35 = vld [vmem:[%s3705_s17 + $0x98] sm:$0xff]  ;;  %v3235_v36 = vpack.c.bf16 %v279_v33, %v277_v32  ;;  %v3668_v59 = vmov 0.0   ;;  %v299_v16 = vlaneseq  ;;  %s3670_s0 = smov 16  }
  0x4a   :  { %v3237_v37 = vpack.c.bf16 %v284_v35, %v282_v34  ;;  %v281_v38 = vld [vmem:[%s3705_s17 + $0x80] sm:$0xff]  ;;  %v283_v39 = vld [vmem:[%s3705_s17 + $0x90] sm:$0xff]  ;;  %v286_v40 = vld [vmem:[%s3705_s17 + $0xa8] sm:$0xff]  ;;  %373 = vmatprep.mubr.f32.mxu1 %v3668_v59  ;;  %s3671_s5 = smov 112   ;;  %vm3672_vm1 = vmmov 0   ;;  %vm424_vm2 = vcmask 130048  }
  0x4b   :  { %3232 = vmatpush1.bf16.msra.mxu1 %v3231_v30  ;;  %v288_v41 = vld [vmem:[%s3705_s17 + $0xb8] sm:$0xff]  ;;  %v3239_v42 = vpack.c.bf16 %v283_v39, %v281_v38  ;;  %v285_v44 = vld [vmem:[%s3705_s17 + $0xa0] sm:$0xff]  ;;  %v287_v45 = vld [vmem:[%s3705_s17 + $0xb0] sm:$0xff]  ;;  %v3930_v17 = vshrl.u32 %v299_v16, 7  ;;  %vm452_vm3 = vcmask 916480   ;;  %s4361_s9 = sld [smem:[#allocation10_spill]] }
  0x4c   :  { %3234 = vmatprep.subr.bf16.mxu1 %v3233_v31  ;;  %v3241_v43 = vpack.c.bf16 %v288_v41, %v286_v40  ;;  %v290_v46 = vld [vmem:[%s3705_s17 + $0xc8] sm:$0xff]  ;;  %v292_v47 = vld [vmem:[%s3705_s17 + $0xd8] sm:$0xff]  ;;  %v3243_v48 = vpack.c.bf16 %v287_v45, %v285_v44  ;;  %v289_v50 = vld [vmem:[%s3705_s17 + $0xc0] sm:$0xff]  ;;  %v3669_v41 = vmov 0.0|0.0   ;;  %vm1057_vm4 = vcmask 392192   ;;  %s4370_s12 = sld [smem:[#allocation15_spill]] }
  0x4d   :  { %v3245_v49 = vpack.c.bf16 %v292_v47, %v290_v46  ;;  %v291_v51 = vld [vmem:[%s3705_s17 + $0xd0] sm:$0xff]  ;;  %v294_v53 = vld [vmem:[%s3705_s17 + $0xe8] sm:$0xff]  ;;  %v296_v54 = vld [vmem:[%s3705_s17 + $0xf8] sm:$0xff]  ;;  %v3933_v18 = vsub.s32 0, %v3930_v17  ;;  %v305_v20 = vsub.s32 1, %v3930_v17  ;;  %vm1081_vm5 = vcmask 654336  }
  0x4e   :  { %v3247_v52 = vpack.c.bf16 %v291_v51, %v289_v50  ;;  %v3249_v55 = vpack.c.bf16 %v296_v54, %v294_v53  ;;  %v293_v56 = vld [vmem:[%s3705_s17 + $0xe0] sm:$0xff]  ;;  %v295_v57 = vld [vmem:[%s3705_s17 + $0xf0] sm:$0xff]  ;;  %v432_v2 = vld [vmem:[%s3715_s25 + $0x8] sm:$0xff]  ;;  %s3674_s17 = smov 96   ;;  %vm1766_vm6 = vcmask 1041408   ;;  %vm3675_vm7 = vmmov 1  }
  0x4f   :  { %3236 = vmatpush1.bf16.msra.mxu1 %v3235_v36  ;;  %v3251_v58 = vpack.c.bf16 %v295_v57, %v293_v56  ;;  %v2725_v60 = vld [vmem:[%s3700_s13] ss:$0 sm:$0xff]  ;;  %v433_v3 = vld [vmem:[%s3715_s25 + $0x10] sm:$0xff]  ;;  %v434_v5 = vld [vmem:[%s3715_s25 + $0x18] sm:$0xff]  ;;  %s3673_s13 = smov 48   ;;  %vm1762_vm9 = vcmask 80896  }
  0x50   :  { %3238 = vmatprep.subr.bf16.mxu1 %v3237_v37  ;;  %v431_v1 = vld [vmem:[%s3715_s25] sm:$0xff]  ;;  %v3257_v6 = vpack.c.bf16 %v434_v5, %v433_v3  ;;  %v436_v8 = vld [vmem:[%s3715_s25 + $0x28] sm:$0xff]  ;;  %v437_v10 = vld [vmem:[%s3715_s25 + $0x30] sm:$0xff]  ;;  %s3676_s20 = smov 64   ;;  %vm1841_vm10 = vcmask 64512   ;;  %s3677_s4 = smov 32  }
  0x51   :  { %v3253_v4 = vpack.c.bf16 %v432_v2, %v431_v1  ;;  %v435_v7 = vld [vmem:[%s3715_s25 + $0x20] sm:$0xff]  ;;  %v438_v11 = vld [vmem:[%s3715_s25 + $0x38] sm:$0xff]  ;;  %v440_v14 = vld [vmem:[%s3715_s25 + $0x48] sm:$0xff]  ;;  %vm2542_vm11 = vcmask 7168   ;;  %s4373_s10 = sld [smem:[#allocation24_spill]]  ;;  %s4374_s11 = sld [smem:[#allocation19_spill]] }
  0x52   :  { %v3261_v9 = vpack.c.bf16 %v436_v8, %v435_v7  ;;  %v3265_v12 = vpack.c.bf16 %v438_v11, %v437_v10  ;;  %v439_v13 = vld [vmem:[%s3715_s25 + $0x40] sm:$0xff]  ;;  %v441_v36 = vld [vmem:[%s3715_s25 + $0x50] sm:$0xff]  ;;  %v442_v37 = vld [vmem:[%s3715_s25 + $0x58] sm:$0xff]  ;;  %s4375_s16 = sld [smem:[#allocation20_spill]]  ;;  %s4376_s15 = sld [smem:[#allocation23_spill]]  ;;  %vm2644_vm14 = vcmask 0  }
  0x53   :  { %3240 = vmatpush1.bf16.msra.mxu1 %v3239_v42  ;;  %3254 = vmatprep.subr.bf16.mxu0 %v3253_v4  ;;  %v3269_v15 = vpack.c.bf16 %v440_v14, %v439_v13  ;;  %v297_v19 = vld [vmem:[%s3710_s21] sm:$0x3]  ;;  %v3273_v40 = vpack.c.bf16 %v442_v37, %v441_v36  ;;  %v568_v44 = vld [vmem:[%s3725_s3 + $0x8] sm:$0xff]  ;;  %v570_v53 = vld [vmem:[%s3725_s3 + $0x18] sm:$0xff]  ;;  %s4362_s21 = sld [smem:[#allocation11_spill]]  ;;  %s4377_s18 = sld [smem:[#allocation22_spill]] }
  0x54   :  { %3242 = vmatprep.subr.bf16.mxu1 %v3241_v43  ;;  %3256 = vmatpush3.bf16.msra.mxu0 %v3253_v4  ;;  %v302_v21 = vrot.slane %v297_v19, %v3933_v18  ;;  %v306_v22 = vrot.slane %v297_v19, %v305_v20  ;;  %v567_v43 = vld [vmem:[%s3725_s3] sm:$0xff]  ;;  %v572_v57 = vld [vmem:[%s3725_s3 + $0x28] sm:$0xff]  ;;  %v577_v8 = vld [vmem:[%s3725_s3 + $0x50] sm:$0xff]  ;;  %s4378_s23 = sld [smem:[#allocation25_spill]]  ;;  %s3679_s26 = smov 1  }
  0x55   :  { %3258 = vmatprep.subr.bf16.mxu0 %v3257_v6  ;;  %v3951_v45 = vpack.c.bf16 %v568_v44, %v567_v43  ;;  %v443_v47 = vld [vmem:[%s3715_s25 + $0x60] sm:$0xff]  ;;  %v576_v5 = vld [vmem:[%s3725_s3 + $0x48] sm:$0xff]  ;;  %vm3439_vm8 = vmpackc.low %vm1766_vm6, %vm3675_vm7  ;;  %s4379_s1 = sld [smem:[#allocation26_spill]]  ;;  %s3680_s28 = smov 2  }
  0x56   :  { %v571_v56 = vld [vmem:[%s3725_s3 + $0x20] sm:$0xff]  ;;  %s3681_s2 = smov [#allocation5]  }
  0x57   :  { %3244 = vmatpush1.bf16.msra.mxu1 %v3243_v48  ;;  %v444_v48 = vld [vmem:[%s3715_s25 + $0x68] sm:$0xff]  ;;  %v575_v4 = vld [vmem:[%s3725_s3 + $0x40] sm:$0xff]  ;;  %s4363_s25 = sld [smem:[#allocation12_spill]]  ;;  %s2678_s7 = sshll.u32 %s3681_s2, 4  ;;  %s2679_s7 = int_to_ptr.vmem [resolvable:$true] %s2678_s7 }
  0x58   :  { %3246 = vmatprep.subr.bf16.mxu1 %v3245_v49  ;;  %3260 = vmatpush3.bf16.msra.mxu0 %v3257_v6  ;;  %v3277_v51 = vpack.c.bf16 %v444_v48, %v443_v47  ;;  %v3981_v6 = vpack.c.bf16 %v576_v5, %v575_v4  ;;  %v579_v11 = vld [vmem:[%s3725_s3 + $0x60] sm:$0xff]  ;;  %p3612_p1 = scmp.lt.s32.totalorder %s2679_s7, %s2679_s7 }
  0x59   :  { %3262 = vmatprep.subr.bf16.mxu0 %v3261_v9 }
  0x5b   :  { %3248 = vmatpush1.bf16.msra.mxu1 %v3247_v52  ;;  %v569_v52 = vld [vmem:[%s3725_s3 + $0x10] sm:$0xff] }
  0x5c   :  { %3250 = vmatprep.subr.bf16.mxu1 %v3249_v55  ;;  %3264 = vmatpush3.bf16.msra.mxu0 %v3261_v9  ;;  %v3959_v55 = vpack.c.bf16 %v570_v53, %v569_v52  ;;  %v578_v9 = vld [vmem:[%s3725_s3 + $0x58] sm:$0xff]  ;;  %v736_v52 = vld [vmem:[%s3730_s8] sm:$0xff]  ;;  %v737_v53 = vld [vmem:[%s3730_s8 + $0x8] sm:$0xff]  ;;  %s4366_s8 = sld [smem:[#allocation8_spill]] }
  0x5d   :  { %3266 = vmatprep.subr.bf16.mxu0 %v3265_v12  ;;  %v3990_v10 = vpack.c.bf16 %v578_v9, %v577_v8  ;;  %v896_v8 = vld [vmem:[%s3735_s14] sm:$0xff]  ;;  %v898_v9 = vld [vmem:[%s3735_s14 + $0x10] sm:$0xff] }
  0x5f   :  { %3252 = vmatpush1.bf16.msra.mxu1 %v3251_v58  ;;  %v3966_v58 = vpack.c.bf16 %v572_v57, %v571_v56  ;;  %v899_v56 = vld [vmem:[%s3735_s14 + $0x18] sm:$0xff] }
  0x60   :  { %3268 = vmatpush3.bf16.msra.mxu0 %v3265_v12  ;;  %3281 = vmatprep.subr.bf16.mxu1 %v3669_v41  ;;  %v580_v12 = vld [vmem:[%s3725_s3 + $0x68] sm:$0xff] }
  0x61   :  { %3270 = vmatprep.subr.bf16.mxu0 %v3269_v15  ;;  %v3300_v13 = vpack.c.bf16 %v580_v12, %v579_v11  ;;  %v901_v11 = vld [vmem:[%s3735_s14 + $0x28] sm:$0xff]  ;;  %v903_v12 = vld [vmem:[%s3735_s14 + $0x38] sm:$0xff] }
  0x64   :  { %3272 = vmatpush3.bf16.msra.mxu0 %v3269_v15 }
  0x65   :  { %3274 = vmatprep.subr.bf16.mxu0 %v3273_v40 }
  0x68   :  { %3276 = vmatpush3.bf16.msra.mxu0 %v3273_v40 }
  0x69   :  { %3278 = vmatprep.subr.bf16.mxu0 %v3277_v51 }
  0x6c   :  { %3280 = vmatpush3.bf16.msra.mxu0 %v3277_v51 }
  0x6d   :  { %3302 = vmatprep.subr.bf16.mxu0 %v3669_v41 }
 0x11b   :  { %v2936_v61 = vpop.f32.mrb[0].mxu0 }
 0x11c   :  { %v254_v62 = vpop.f32.mrb[1].mxu0  ;;  %v3917_v0 = vadd.f32 %v2936_v61, %v2725_v60  ;;  %v573_v61 = vld [vmem:[%s3725_s3 + $0x30] sm:$0xff] }
 0x11d   :  { %v3913_v63 = vadd.f32 %v2725_v60, %v254_v62  ;;  %v574_v62 = vld [vmem:[%s3725_s3 + $0x38] sm:$0xff]  ;;  %s4365_s3 = sld [smem:[#allocation14_spill]] }
 0x11e   :  { %v3973_v2 = vpack.c.bf16 %v574_v62, %v573_v61 }
 0x11f   :  { %374 = vmatmul.mubr.f32.vlgmr.msra.gmra.mrb[0].mxu1 %v3913_v63 }
 0x120   :  { %379 = vmatprep.mubr.f32.mxu1 %v3668_v59  ;;  %3283 = vmatpush3.bf16.msra.mxu1 %v3951_v45 }
 0x121   :  { %3284 = vmatprep.subr.bf16.mxu1 %v3669_v41 }
 0x123   :  { %380 = vmatmul.mubr.f32.gmra.mrb[2].mxu1 %v3917_v0 }
 0x124   :  { %3286 = vmatpush3.bf16.msra.mxu1 %v3959_v55  ;;  %2996 = vmatprep.mubr.msk.f32.mxu1 %vm3672_vm1, %v3668_v59 }
 0x125   :  { %3287 = vmatprep.subr.bf16.mxu1 %v3669_v41 }
 0x128   :  { %3289 = vmatpush3.bf16.msra.mxu1 %v3966_v58 }
 0x129   :  { %3290 = vmatprep.subr.bf16.mxu1 %v3669_v41 }
 0x12c   :  { %3292 = vmatpush3.bf16.msra.mxu1 %v3973_v2 }
 0x12d   :  { %3293 = vmatprep.subr.bf16.mxu1 %v3669_v41 }
 0x130   :  { %3295 = vmatpush3.bf16.msra.mxu1 %v3981_v6 }
 0x131   :  { %3296 = vmatprep.subr.bf16.mxu1 %v3669_v41 }
 0x134   :  { %3298 = vmatpush3.bf16.msra.mxu1 %v3990_v10 }
 0x135   :  { %3299 = vmatprep.subr.bf16.mxu1 %v3669_v41 }
 0x138   :  { %3301 = vmatpush3.bf16.msra.mxu1 %v3300_v13 }
 0x139   :  { %3323 = vmatprep.subr.bf16.mxu1 %v3669_v41 }
 0x1f2   :  { %v375_v23 = vpop.f32.mrb[0].mxu1 }
 0x1f3   :  { %v3940_v24 = vadd.f32 %v375_v23, %v302_v21  ;;  %v377_v25 = vpop.f32.mrb[1].mxu1 }
 0x1f4   :  { %v378_v26 = vadd.f32 %v377_v25, %v306_v22 }
 0x1f5   :  { %v2728_v27 = vmul.f32 -1.442695, %v3940_v24 }
 0x1f6   :  { %v2729_v28 = vmul.f32 -1.442695, %v378_v26  ;;  %v381_v29 = vpop.f32.mrb[2].mxu1 }
 0x1f7   :  { %3519 = vpow2.f32 %v2728_v27  ;;  %v3943_v30 = vadd.f32 %v381_v29, %v302_v21  ;;  %v383_v31 = vpop.f32.mrb[3].mxu1 }
 0x1f8   :  { %3521 = vpow2.f32 %v2729_v28  ;;  %v384_v32 = vadd.f32 %v383_v31, %v306_v22 }
 0x1f9   :  { %v2730_v33 = vmul.f32 -1.442695, %v3943_v30 }
 0x1fa   :  { %v2731_v34 = vmul.f32 -1.442695, %v384_v32 }
 0x1fb   :  { %3523 = vpow2.f32 %v2730_v33 }
 0x1fc   :  { %3525 = vpow2.f32 %v2731_v34 }
 0x201   :  { %v3520_v35 = vpop.eup %3519 }
 0x202   :  { %v3522_v38 = vpop.eup %3521  ;;  %v400_v39 = vadd.f32 1.0, %v3520_v35 }
 0x203   :  { %v401_v42 = vadd.f32 1.0, %v3522_v38 }
 0x204   :  { %3527 = vrcp.f32 %v400_v39 }
 0x205   :  { %v3524_v46 = vpop.eup %3523  ;;  %3529 = vrcp.f32 %v401_v42 }
 0x206   :  { %v3526_v49 = vpop.eup %3525  ;;  %v402_v50 = vadd.f32 1.0, %v3524_v46 }
 0x207   :  { %v403_v54 = vadd.f32 1.0, %v3526_v49 }
 0x208   :  { %3531 = vrcp.f32 %v402_v50 }
 0x209   :  { %3533 = vrcp.f32 %v403_v54  ;;  %v3324_v54 = vpack.c.bf16 %v737_v53, %v736_v52  ;;  %v923_v52 = vld [vmem:[%s3735_s14 + $0xd8] sm:$0xff] }
 0x20a   :  { %3535 = vtanh.f32 %v3940_v24 }
 0x20b   :  { %3537 = vtanh.f32 %v3943_v30 }
 0x20e   :  { %v3528_v60 = vpop.eup %3527 }
 0x20f   :  { %416 = vrot.lane.b32.xlu0 %v3528_v60, %s3670_s0  ;;  %v3530_v1 = vpop.eup %3529 }
 0x212   :  { %v3532_v3 = vpop.eup %3531 }
 0x213   :  { %420 = vrot.lane.b32.xlu1 %v3532_v3, %s3670_s0  ;;  %418 = vrot.lane.b32.xlu0 %v3530_v1, %s3670_s0  ;;  %v3534_v7 = vpop.eup %3533 }
 0x214   :  { %v3536_v15 = vpop.eup %3535 }
 0x215   :  { %v3538_v23 = vpop.eup %3537 }
 0x217   :  { %422 = vrot.lane.b32.xlu1 %v3534_v7, %s3670_s0  ;;  %536 = vrot.lane.b32.xlu0 %v3913_v63, %s3671_s5 }
 0x21b   :  { %538 = vrot.lane.b32.xlu1 %v3917_v0, %s3671_s5 }
 0x281   :  { %v417_v63 = vpop.permute.xlu0 %416 }
 0x285   :  { %v421_v0 = vpop.permute.xlu1 %420  ;;  %v419_v14 = vpop.permute.xlu0 %418 }
 0x286   :  { %v425_v16 = vsel %vm424_vm2, %v417_v63, %v419_v14  ;;  %v3331_v63 = vpack.c.bf16 %v898_v9, %v896_v8  ;;  %v3333_v14 = vpack.c.bf16 %v903_v12, %v901_v11  ;;  %v1066_v8 = vld [vmem:[%s3745_s24 + $0x10] sm:$0xff]  ;;  %v1067_v11 = vld [vmem:[%s3745_s24 + $0x18] sm:$0xff] }
 0x287   :  { %v429_v19 = vmul.f32 %v3536_v15, %v425_v16  ;;  %v900_v15 = vld [vmem:[%s3735_s14 + $0x20] sm:$0xff]  ;;  %v902_v16 = vld [vmem:[%s3735_s14 + $0x30] sm:$0xff]  ;;  %v3361_v12 = vpack.c.bf16 %v1067_v11, %v1066_v8 }
 0x289   :  { %v423_v21 = vpop.permute.xlu1 %422  ;;  %v537_v22 = vpop.permute.xlu0 %536  ;;  %2965 = vmatprep.mubr.msk.f32.mxu0 %vm452_vm3, %v429_v19 }
 0x28a   :  { %v426_v25 = vsel %vm424_vm2, %v421_v0, %v423_v21  ;;  %v4006_v26 = vadd.f32 %v537_v22, %v429_v19  ;;  %v4061_v19 = vld [vmem:[%s3790_s27] sm:$0x7]  ;;  %v905_v21 = vld [vmem:[%s3735_s14 + $0x48] sm:$0xff]  ;;  %v907_v22 = vld [vmem:[%s3735_s14 + $0x58] sm:$0xff]  ;;  %s4371_s27 = sld [smem:[#allocation18_spill]] }
 0x28b   :  { %v430_v24 = vmul.f32 %v3538_v23, %v426_v25  ;;  %v3335_v25 = vpack.c.bf16 %v902_v16, %v900_v15 }
 0x28c   :  { %v555_v28 = vmul.f32 %v4006_v26, %v4006_v26  ;;  %v544_v30 = vsel %vm452_vm3, %v4006_v26, 0.0 }
 0x28d   :  { %v539_v27 = vpop.permute.xlu1 %538  ;;  %2966 = vmatmul.mubr.msk.f32.vlgmr.msra.gmra.mrb[2].mxu0 %vm452_vm3, %v430_v24 }
 0x28e   :  { %v4011_v29 = vadd.f32 %v539_v27, %v430_v24  ;;  %3304 = vmatpush3.bf16.msra.mxu0 %v3951_v45  ;;  %3027 = vmatprep.mubr.msk.f32.mxu0 %vm3672_vm1, %v3668_v59  ;;  %v557_v34 = vsel %vm452_vm3, %v555_v28, 0.0  ;;  %v3337_v27 = vpack.c.bf16 %v907_v22, %v905_v21  ;;  %v904_v28 = vld [vmem:[%s3735_s14 + $0x40] sm:$0xff] }
 0x28f   :  { %3305 = vmatprep.subr.bf16.mxu0 %v3669_v41 }
 0x290   :  { %v545_v31 = vsel %vm452_vm3, %v4011_v29, 0.0  ;;  %v556_v32 = vmul.f32 %v4011_v29, %v4011_v29 }
 0x291   :  { %v546_v33 = vadd.f32 %v545_v31, %v544_v30  ;;  %v906_v30 = vld [vmem:[%s3735_s14 + $0x50] sm:$0xff]  ;;  %v909_v31 = vld [vmem:[%s3735_s14 + $0x68] sm:$0xff] }
 0x292   :  { %v558_v35 = vsel %vm452_vm3, %v556_v32, 0.0  ;;  %3307 = vmatpush3.bf16.msra.mxu0 %v3959_v55  ;;  %v897_v55 = vld [vmem:[%s3735_s14 + $0x8] sm:$0xff]  ;;  %v911_v32 = vld [vmem:[%s3735_s14 + $0x78] sm:$0xff] }
 0x293   :  { %v547_v36 = vrot.slane %v546_v33, 4  ;;  %v559_v37 = vadd.f32 %v558_v35, %v557_v34  ;;  %3308 = vmatprep.subr.bf16.mxu0 %v3669_v41  ;;  %v3329_v57 = vpack.c.bf16 %v899_v56, %v897_v55  ;;  %v3341_v34 = vpack.c.bf16 %v911_v32, %v909_v31  ;;  %v908_v35 = vld [vmem:[%s3735_s14 + $0x60] sm:$0xff]  ;;  %v922_v55 = vld [vmem:[%s3735_s14 + $0xd0] sm:$0xff] }
 0x295   :  { %v548_v38 = vadd.f32 %v547_v36, %v546_v33  ;;  %v560_v39 = vrot.slane %v559_v37, 4  ;;  %v3339_v33 = vpack.c.bf16 %v906_v30, %v904_v28  ;;  %v910_v36 = vld [vmem:[%s3735_s14 + $0x70] sm:$0xff] }
 0x296   :  { %3310 = vmatpush3.bf16.msra.mxu0 %v3966_v58 }
 0x297   :  { %v549_v40 = vrot.slane %v548_v38, 2  ;;  %v561_v42 = vadd.f32 %v560_v39, %v559_v37  ;;  %3311 = vmatprep.subr.bf16.mxu0 %v3669_v41  ;;  %v913_v37 = vld [vmem:[%s3735_s14 + $0x88] sm:$0xff]  ;;  %v3343_v39 = vpack.c.bf16 %v910_v36, %v908_v35 }
 0x299   :  { %v550_v43 = vadd.f32 %v549_v40, %v548_v38  ;;  %v562_v44 = vrot.slane %v561_v42, 2  ;;  %v915_v38 = vld [vmem:[%s3735_s14 + $0x98] sm:$0xff] }
 0x29a   :  { %3313 = vmatpush3.bf16.msra.mxu0 %v3973_v2  ;;  %v3345_v40 = vpack.c.bf16 %v915_v38, %v913_v37 }
 0x29b   :  { %v551_v45 = vrot.slane %v550_v43, 1  ;;  %v563_v46 = vadd.f32 %v562_v44, %v561_v42  ;;  %3314 = vmatprep.subr.bf16.mxu0 %v3669_v41  ;;  %v912_v42 = vld [vmem:[%s3735_s14 + $0x80] sm:$0xff] }
 0x29d   :  { %v552_v47 = vadd.f32 %v551_v45, %v550_v43  ;;  %v564_v49 = vrot.slane %v563_v46, 1  ;;  %v914_v43 = vld [vmem:[%s3735_s14 + $0x90] sm:$0xff]  ;;  %v917_v45 = vld [vmem:[%s3735_s14 + $0xa8] sm:$0xff] }
 0x29e   :  { %3316 = vmatpush3.bf16.msra.mxu0 %v3981_v6  ;;  %v3347_v44 = vpack.c.bf16 %v914_v43, %v912_v42  ;;  %v1073_v42 = vld [vmem:[%s3745_s24 + $0x48] sm:$0xff] }
 0x29f   :  { %v554_v48 = vmul.f32 0.0625, %v552_v47  ;;  %3317 = vmatprep.subr.bf16.mxu0 %v3669_v41  ;;  %v565_v50 = vadd.f32 %v564_v49, %v563_v46  ;;  %v919_v46 = vld [vmem:[%s3735_s14 + $0xb8] sm:$0xff]  ;;  %v918_v49 = vld [vmem:[%s3735_s14 + $0xb0] sm:$0xff] }
 0x2a0   :  { %v3349_v47 = vpack.c.bf16 %v919_v46, %v917_v45 }
 0x2a1   :  { %2997 = vmatmul.mubr.msk.f32.vlgmr.msra.gmra.mrb[4].mxu1 %vm452_vm3, %v554_v48  ;;  %v566_v51 = vmul.f32 0.0625, %v565_v50  ;;  %v916_v48 = vld [vmem:[%s3735_s14 + $0xa0] sm:$0xff] }
 0x2a2   :  { %3319 = vmatpush3.bf16.msra.mxu0 %v3990_v10  ;;  %3034 = vmatprep.mubr.msk.f32.mxu1 %vm3672_vm1, %v3668_v59  ;;  %v4053_v10 = vld [vmem:[%s3785_s29] sm:$0x7]  ;;  %v3351_v50 = vpack.c.bf16 %v918_v49, %v916_v48  ;;  %v1204_v49 = vld [vmem:[%s4361_s9 + $0x8] sm:$0xff]  ;;  %s4364_s29 = sld [smem:[#allocation13_spill]] }
 0x2a3   :  { %3320 = vmatprep.subr.bf16.mxu0 %v3669_v41  ;;  %3325 = vmatpush3.bf16.msra.mxu1 %v3324_v54  ;;  %v1203_v48 = vld [vmem:[%s4361_s9] sm:$0xff] }
 0x2a4   :  { %3330 = vmatprep.subr.bf16.mxu1 %v3329_v57 }
 0x2a6   :  { %3322 = vmatpush3.bf16.msra.mxu0 %v3300_v13 }
 0x2a7   :  { %3326 = vmatprep.subr.bf16.mxu0 %v3669_v41 }
 0x2a9   :  { %3028 = vmatmul.mubr.msk.f32.vlgmr.msra.gmra.mrb[4].mxu0 %vm452_vm3, %v566_v51  ;;  %v921_v51 = vld [vmem:[%s3735_s14 + $0xc8] sm:$0xff] }
 0x2aa   :  { %3041 = vmatprep.mubr.msk.f32.mxu0 %vm3672_vm1, %v3668_v59  ;;  %3328 = vmatpush3.bf16.msra.mxu0 %v3324_v54  ;;  %v3353_v53 = vpack.c.bf16 %v923_v52, %v921_v51  ;;  %v920_v54 = vld [vmem:[%s3735_s14 + $0xc0] sm:$0xff]  ;;  %v1205_v51 = vld [vmem:[%s4361_s9 + $0x10] sm:$0xff]  ;;  %v1206_v52 = vld [vmem:[%s4361_s9 + $0x18] sm:$0xff]  ;;  %s4367_s14 = sld [smem:[#allocation17_spill]] }
 0x2ab   :  { %v3355_v56 = vpack.c.bf16 %v922_v55, %v920_v54 }
 0x360   :  { %v4046_v58 = vpop.f32.mrb[2].mxu0 }
 0x361   :  { %v4048_v60 = vpop.f32.mrb[3].mxu0 }
 0x374   :  { %v650_v61 = vpop.f32.mrb[4].mxu1 }
 0x375   :  { %v2998_v62 = vpop.f32.mrb[5].mxu1  ;;  %v654_v1 = vmul.f32 0.14285715, %v650_v61 }
 0x377   :  { %v729_v3 = vmul.f32 %v654_v1, %v654_v1 }
 0x37c   :  { %v724_v2 = vpop.f32.mrb[4].mxu0 }
 0x37d   :  { %v728_v4 = vmul.f32 0.14285715, %v724_v2  ;;  %v3029_v5 = vpop.f32.mrb[5].mxu0 }
 0x37f   :  { %v730_v6 = vsub.f32 %v728_v4, %v729_v3 }
 0x381   :  { %v731_v7 = vadd.f32 1e-05, %v730_v6 }
 0x383   :  { %3539 = vrsqrt.f32 %v731_v7 }
 0x38d   :  { %v3540_v13 = vpop.eup %3539 }
 0x38e   :  { %v733_v0 = vmul.f32 %v3540_v13, %v4053_v10  ;;  %v1068_v13 = vld [vmem:[%s3745_s24 + $0x20] sm:$0xff] }
 0x390   :  { %3035 = vmatmul.mubr.msk.f32.vlgmr.msra.gmra.mrb[6].mxu1 %vm424_vm2, %v733_v0  ;;  %v734_v23 = vmul.f32 %v733_v0, %v654_v1 }
 0x391   :  { %3332 = vmatpush1.bf16.msra.mxu1 %v3331_v63  ;;  %1006 = vmatprep.mubr.f32.mxu1 %v3668_v59  ;;  %v1069_v63 = vld [vmem:[%s3745_s24 + $0x28] sm:$0xff] }
 0x392   :  { %v735_v24 = vsub.f32 %v4061_v19, %v734_v23  ;;  %3334 = vmatprep.subr.bf16.mxu1 %v3333_v14  ;;  %v3365_v0 = vpack.c.bf16 %v1069_v63, %v1068_v13  ;;  %v924_v14 = vld [vmem:[%s3740_s19] sm:$0x3]  ;;  %s4368_s19 = sld [smem:[#allocation9_spill]] }
 0x393   :  { %v929_v15 = vrot.slane %v924_v14, %v3933_v18  ;;  %v933_v16 = vrot.slane %v924_v14, %v305_v20 }
 0x394   :  { %3042 = vmatmul.mubr.msk.f32.vlgmr.msra.gmra.mrb[6].mxu0 %vm424_vm2, %v735_v24 }
 0x395   :  { %3336 = vmatpush1.bf16.msra.mxu1 %v3335_v25 }
 0x396   :  { %3338 = vmatprep.subr.bf16.mxu1 %v3337_v27 }
 0x399   :  { %3340 = vmatpush1.bf16.msra.mxu1 %v3339_v33  ;;  %v1070_v33 = vld [vmem:[%s3745_s24 + $0x30] sm:$0xff] }
 0x39a   :  { %3342 = vmatprep.subr.bf16.mxu1 %v3341_v34  ;;  %v1071_v34 = vld [vmem:[%s3745_s24 + $0x38] sm:$0xff] }
 0x39b   :  { %v3369_v35 = vpack.c.bf16 %v1071_v34, %v1070_v33 }
 0x39d   :  { %3344 = vmatpush1.bf16.msra.mxu1 %v3343_v39 }
 0x39e   :  { %3346 = vmatprep.subr.bf16.mxu1 %v3345_v40  ;;  %v1072_v40 = vld [vmem:[%s3745_s24 + $0x40] sm:$0xff] }
 0x39f   :  { %v3373_v43 = vpack.c.bf16 %v1073_v42, %v1072_v40 }
 0x3a1   :  { %3348 = vmatpush1.bf16.msra.mxu1 %v3347_v44 }
 0x3a2   :  { %3350 = vmatprep.subr.bf16.mxu1 %v3349_v47 }
 0x3a5   :  { %3352 = vmatpush1.bf16.msra.mxu1 %v3351_v50  ;;  %v3378_v50 = vpack.c.bf16 %v1204_v49, %v1203_v48  ;;  %v1537_v49 = vld [vmem:[%s4363_s25] sm:$0xff] }
 0x3a6   :  { %3354 = vmatprep.subr.bf16.mxu1 %v3353_v53  ;;  %v3381_v53 = vpack.c.bf16 %v1206_v52, %v1205_v51  ;;  %v1539_v51 = vld [vmem:[%s4363_s25 + $0x10] sm:$0xff] }
 0x3a9   :  { %3356 = vmatpush1.bf16.msra.mxu1 %v3355_v56  ;;  %v1207_v56 = vld [vmem:[%s4361_s9 + $0x20] sm:$0xff] }
 0x3aa   :  { %3392 = vmatprep.subr.bf16.mxu1 %v3669_v41 }
 0x463   :  { %v807_v57 = vpop.f32.mrb[6].mxu1 }
 0x464   :  { %v887_v61 = vrot.slane %v807_v57, %v3933_v18  ;;  %v3036_v62 = vpop.f32.mrb[7].mxu1  ;;  %v1208_v57 = vld [vmem:[%s4361_s9 + $0x28] sm:$0xff] }
 0x466   :  { %v888_v2 = vmul.f32 %v887_v61, %v4006_v26  ;;  %v889_v3 = vmul.f32 %v887_v61, %v4011_v29  ;;  %v1064_v26 = vld [vmem:[%s3745_s24] sm:$0xff]  ;;  %v1065_v29 = vld [vmem:[%s3745_s24 + $0x8] sm:$0xff]  ;;  %v3384_v61 = vpack.c.bf16 %v1208_v57, %v1207_v56  ;;  %s4369_s24 = sld [smem:[#allocation16_spill]] }
 0x467   :  { %v880_v1 = vpop.f32.mrb[6].mxu0  ;;  %v3357_v9 = vpack.c.bf16 %v1065_v29, %v1064_v26  ;;  %v1212_v26 = vld [vmem:[%s4361_s9 + $0x48] sm:$0xff] }
 0x468   :  { %v893_v4 = vrot.slane %v880_v1, %v3933_v18  ;;  %v3043_v5 = vpop.f32.mrb[7].mxu0 }
 0x469   :  { %3358 = vmatprep.subr.bf16.mxu0 %v3357_v9  ;;  %v1211_v5 = vld [vmem:[%s4361_s9 + $0x40] sm:$0xff] }
 0x46a   :  { %v4092_v6 = vadd.f32 %v893_v4, %v888_v2  ;;  %v4094_v7 = vadd.f32 %v893_v4, %v889_v3  ;;  %3360 = vmatpush3.bf16.msra.mxu0 %v3357_v9  ;;  %v1209_v2 = vld [vmem:[%s4361_s9 + $0x30] sm:$0xff]  ;;  %v1210_v3 = vld [vmem:[%s4361_s9 + $0x38] sm:$0xff]  ;;  %v3390_v29 = vpack.c.bf16 %v1212_v26, %v1211_v5 }
 0x46b   :  { %3362 = vmatprep.subr.bf16.mxu0 %v3361_v12  ;;  %v3387_v4 = vpack.c.bf16 %v1210_v3, %v1209_v2 }
 0x46c   :  { %2739 = vmatmul.mubr.msk.f32.vlgmr.msra.gmra.mrb[8].mxu1 %vm452_vm3, %v4092_v6 }
 0x46d   :  { %1012 = vmatprep.mubr.f32.mxu1 %v3668_v59  ;;  %3394 = vmatpush3.bf16.msra.mxu1 %v3378_v50 }
 0x46e   :  { %3364 = vmatpush3.bf16.msra.mxu0 %v3361_v12  ;;  %3395 = vmatprep.subr.bf16.mxu1 %v3669_v41 }
 0x46f   :  { %3366 = vmatprep.subr.bf16.mxu0 %v3365_v0 }
 0x470   :  { %2740 = vmatmul.mubr.msk.f32.gmra.mrb[10].mxu1 %vm452_vm3, %v4094_v7 }
 0x471   :  { %3110 = vmatprep.mubr.msk.f32.mxu1 %vm3672_vm1, %v3668_v59  ;;  %3397 = vmatpush3.bf16.msra.mxu1 %v3381_v53 }
 0x472   :  { %3368 = vmatpush3.bf16.msra.mxu0 %v3365_v0  ;;  %3398 = vmatprep.subr.bf16.mxu1 %v3669_v41 }
 0x473   :  { %3370 = vmatprep.subr.bf16.mxu0 %v3369_v35 }
 0x475   :  { %3400 = vmatpush3.bf16.msra.mxu1 %v3384_v61 }
 0x476   :  { %3372 = vmatpush3.bf16.msra.mxu0 %v3369_v35  ;;  %3401 = vmatprep.subr.bf16.mxu1 %v3669_v41 }
 0x477   :  { %3374 = vmatprep.subr.bf16.mxu0 %v3373_v43 }
 0x479   :  { %3403 = vmatpush3.bf16.msra.mxu1 %v3387_v4 }
 0x47a   :  { %3376 = vmatpush3.bf16.msra.mxu0 %v3373_v43  ;;  %3404 = vmatprep.subr.bf16.mxu1 %v3669_v41 }
 0x47b   :  { %3377 = vmatprep.subr.bf16.mxu0 %v3669_v41 }
 0x47d   :  { %3406 = vmatpush3.bf16.msra.mxu1 %v3390_v29 }
 0x53f   :  { %v1008_v21 = vpop.f32.mrb[8].mxu1 }
 0x540   :  { %v4113_v22 = vadd.f32 %v1008_v21, %v929_v15  ;;  %v1010_v23 = vpop.f32.mrb[9].mxu1 }
 0x541   :  { %v1011_v25 = vadd.f32 %v1010_v23, %v933_v16 }
 0x542   :  { %v2741_v24 = vmul.f32 -1.442695, %v4113_v22 }
 0x543   :  { %v2742_v27 = vmul.f32 -1.442695, %v1011_v25  ;;  %v1014_v28 = vpop.f32.mrb[10].mxu1 }
 0x544   :  { %3541 = vpow2.f32 %v2741_v24  ;;  %v4116_v30 = vadd.f32 %v1014_v28, %v929_v15  ;;  %v1016_v31 = vpop.f32.mrb[11].mxu1 }
 0x545   :  { %3543 = vpow2.f32 %v2742_v27  ;;  %v1017_v17 = vadd.f32 %v1016_v31, %v933_v16 }
 0x546   :  { %v2743_v20 = vmul.f32 -1.442695, %v4116_v30 }
 0x547   :  { %v2744_v32 = vmul.f32 -1.442695, %v1017_v17 }
 0x548   :  { %3545 = vpow2.f32 %v2743_v20 }
 0x549   :  { %3547 = vpow2.f32 %v2744_v32 }
 0x54e   :  { %v3542_v36 = vpop.eup %3541 }
 0x54f   :  { %v3544_v37 = vpop.eup %3543  ;;  %v1033_v38 = vadd.f32 1.0, %v3542_v36 }
 0x550   :  { %v1034_v39 = vadd.f32 1.0, %v3544_v37 }
 0x551   :  { %3549 = vrcp.f32 %v1033_v38 }
 0x552   :  { %v3546_v44 = vpop.eup %3545  ;;  %3551 = vrcp.f32 %v1034_v39 }
 0x553   :  { %v3548_v45 = vpop.eup %3547  ;;  %v1035_v46 = vadd.f32 1.0, %v3546_v44 }
 0x554   :  { %v1036_v47 = vadd.f32 1.0, %v3548_v45 }
 0x555   :  { %3553 = vrcp.f32 %v1035_v46  ;;  %v1377_v46 = vld [vmem:[%s4362_s21] sm:$0xff] }
 0x556   :  { %3555 = vrcp.f32 %v1036_v47  ;;  %v1378_v47 = vld [vmem:[%s4362_s21 + $0x8] sm:$0xff] }
 0x557   :  { %3557 = vtanh.f32 %v4113_v22  ;;  %v3408_v48 = vpack.c.bf16 %v1378_v47, %v1377_v46 }
 0x558   :  { %3559 = vtanh.f32 %v4116_v30 }
 0x55b   :  { %v3550_v54 = vpop.eup %3549 }
 0x55c   :  { %v3552_v55 = vpop.eup %3551  ;;  %1049 = vrot.lane.b32.xlu0 %v3550_v54, %s3673_s13 }
 0x55d   :  { %1051 = vrot.lane.b32.xlu1 %v3552_v55, %s3673_s13 }
 0x55f   :  { %v3554_v62 = vpop.eup %3553 }
 0x560   :  { %v3556_v1 = vpop.eup %3555  ;;  %1053 = vrot.lane.b32.xlu0 %v3554_v62, %s3673_s13 }
 0x561   :  { %1055 = vrot.lane.b32.xlu1 %v3556_v1, %s3673_s13  ;;  %v3558_v11 = vpop.eup %3557 }
 0x562   :  { %v3560_v63 = vpop.eup %3559 }
 0x564   :  { %1173 = vrot.lane.b32.xlu0 %v4092_v6, %s3674_s17 }
 0x565   :  { %1175 = vrot.lane.b32.xlu1 %v4094_v7, %s3674_s17 }
 0x5ce   :  { %v1050_v8 = vpop.permute.xlu0 %1049 }
 0x5cf   :  { %v1052_v9 = vpop.permute.xlu1 %1051 }
 0x5d0   :  { %v1058_v6 = vsel %vm1057_vm4, %v1050_v8, %v1052_v9 }
 0x5d1   :  { %v1062_v12 = vmul.f32 %v3558_v11, %v1058_v6 }
 0x5d2   :  { %v1054_v13 = vpop.permute.xlu0 %1053 }
 0x5d3   :  { %v1056_v7 = vpop.permute.xlu1 %1055  ;;  %3064 = vmatprep.mubr.msk.f32.mxu0 %vm1081_vm5, %v1062_v12 }
 0x5d4   :  { %v1059_v0 = vsel %vm1057_vm4, %v1054_v13, %v1056_v7 }
 0x5d5   :  { %v1063_v14 = vmul.f32 %v3560_v63, %v1059_v0  ;;  %v1541_v63 = vld [vmem:[%s4363_s25 + $0x20] sm:$0xff]  ;;  %v1542_v0 = vld [vmem:[%s4363_s25 + $0x28] sm:$0xff] }
 0x5d6   :  { %v1174_v15 = vpop.permute.xlu0 %1173 }
 0x5d7   :  { %v4147_v16 = vadd.f32 %v1174_v15, %v1062_v12  ;;  %v1176_v21 = vpop.permute.xlu1 %1175  ;;  %3065 = vmatmul.mubr.msk.f32.vlgmr.msra.gmra.mrb[8].mxu0 %vm1081_vm5, %v1063_v14  ;;  %v1544_v15 = vld [vmem:[%s4363_s25 + $0x38] sm:$0xff] }
 0x5d8   :  { %v4150_v22 = vadd.f32 %v1176_v21, %v1063_v14  ;;  %3379 = vmatpush3.bf16.msra.mxu0 %v3378_v50  ;;  %3087 = vmatprep.mubr.msk.f32.mxu0 %vm3672_vm1, %v3668_v59  ;;  %v1538_v50 = vld [vmem:[%s4363_s25 + $0x8] sm:$0xff]  ;;  %v1543_v14 = vld [vmem:[%s4363_s25 + $0x30] sm:$0xff] }
 0x5d9   :  { %v1181_v23 = vsel %vm1081_vm5, %v4147_v16, 0.0  ;;  %v1191_v25 = vmul.f32 %v4147_v16, %v4147_v16  ;;  %3380 = vmatprep.subr.bf16.mxu0 %v3669_v41  ;;  %v3413_v52 = vpack.c.bf16 %v1538_v50, %v1537_v49  ;;  %v3425_v21 = vpack.c.bf16 %v1544_v15, %v1543_v14  ;;  %v2732_v49 = vld [vmem:[%s4366_s8] ss:$0 sm:$0xff] }
 0x5da   :  { %v1182_v24 = vsel %vm1081_vm5, %v4150_v22, 0.0  ;;  %v1192_v27 = vmul.f32 %v4150_v22, %v4150_v22  ;;  %v526_v50 = vadd.f32 %v2732_v49, %v4048_v60 }
 0x5db   :  { %v1193_v28 = vsel %vm1081_vm5, %v1191_v25, 0.0  ;;  %v1183_v30 = vadd.f32 %v1182_v24, %v1181_v23  ;;  %3414 = vmatprep.subr.bf16.mxu1 %v3413_v52  ;;  %v1545_v23 = vld [vmem:[%s4363_s25 + $0x40] sm:$0xff]  ;;  %v1546_v25 = vld [vmem:[%s4363_s25 + $0x48] sm:$0xff] }
 0x5dc   :  { %v1194_v31 = vsel %vm1081_vm5, %v1192_v27, 0.0  ;;  %3382 = vmatpush3.bf16.msra.mxu0 %v3381_v53  ;;  %v1540_v53 = vld [vmem:[%s4363_s25 + $0x18] sm:$0xff]  ;;  %v3429_v24 = vpack.c.bf16 %v1546_v25, %v1545_v23 }
 0x5dd   :  { %v1184_v17 = vrot.slane %v1183_v30, 4  ;;  %v1195_v20 = vadd.f32 %v1194_v31, %v1193_v28  ;;  %3383 = vmatprep.subr.bf16.mxu0 %v3669_v41  ;;  %v3417_v54 = vpack.c.bf16 %v1540_v53, %v1539_v51  ;;  %v531_v51 = vadd.f32 %v4046_v58, %v2732_v49  ;;  %v2168_v49 = vld [vmem:[%s4371_s27 + $0x20] sm:$0xff] }
 0x5df   :  { %v1185_v32 = vadd.f32 %v1184_v17, %v1183_v30  ;;  %v1196_v33 = vrot.slane %v1195_v20, 4 }
 0x5e0   :  { %3385 = vmatpush3.bf16.msra.mxu0 %v3384_v61 }
 0x5e1   :  { %v1186_v34 = vrot.slane %v1185_v32, 2  ;;  %v1197_v35 = vadd.f32 %v1196_v33, %v1195_v20  ;;  %3386 = vmatprep.subr.bf16.mxu0 %v3669_v41 }
 0x5e3   :  { %v1187_v36 = vadd.f32 %v1186_v34, %v1185_v32  ;;  %v1198_v37 = vrot.slane %v1197_v35, 2 }
 0x5e4   :  { %3388 = vmatpush3.bf16.msra.mxu0 %v3387_v4 }
 0x5e5   :  { %v1188_v38 = vrot.slane %v1187_v36, 1  ;;  %v1199_v39 = vadd.f32 %v1198_v37, %v1197_v35  ;;  %3389 = vmatprep.subr.bf16.mxu0 %v3669_v41  ;;  %v2752_v35 = vld [vmem:[%s4364_s29] ss:$0 sm:$0xff] }
 0x5e7   :  { %v1189_v40 = vadd.f32 %v1188_v38, %v1187_v36  ;;  %v1200_v42 = vrot.slane %v1199_v39, 1 }
 0x5e8   :  { %3391 = vmatpush3.bf16.msra.mxu0 %v3390_v29 }
 0x5e9   :  { %v1201_v43 = vadd.f32 %v1200_v42, %v1199_v39  ;;  %v1190_v44 = vmul.f32 0.0625, %v1189_v40  ;;  %3407 = vmatprep.subr.bf16.mxu0 %v3669_v41  ;;  %v1660_v40 = vld [vmem:[%s4365_s3 + $0x8] sm:$0xff] }
 0x5eb   :  { %v1202_v45 = vmul.f32 0.0625, %v1201_v43  ;;  %3088 = vmatmul.mubr.msk.f32.vlgmr.msra.gmra.mrb[10].mxu0 %vm1081_vm5, %v1190_v44 }
 0x5ec   :  { %3117 = vmatprep.mubr.msk.f32.mxu0 %vm3672_vm1, %v3668_v59  ;;  %3409 = vmatpush3.bf16.msra.mxu0 %v3408_v48 }
 0x5ed   :  { %3111 = vmatmul.mubr.msk.f32.vlgmr.msra.gmra.mrb[12].mxu1 %vm1081_vm5, %v1202_v45  ;;  %3410 = vmatprep.subr.bf16.mxu0 %v3669_v41 }
 0x5ee   :  { %3416 = vmatpush3.bf16.msra.mxu1 %v3413_v52  ;;  %v1761_v52 = vld [vmem:[%s4367_s14 + $0x8] sm:$0x3] }
 0x5ef   :  { %3418 = vmatprep.subr.bf16.mxu1 %v3417_v54 }
 0x5f2   :  { %3420 = vmatpush3.bf16.msra.mxu1 %v3417_v54 }
 0x6aa   :  { %v4180_v55 = vpop.f32.mrb[8].mxu0 }
 0x6ab   :  { %v4182_v56 = vpop.f32.mrb[9].mxu0 }
 0x6be   :  { %v1282_v57 = vpop.f32.mrb[10].mxu0 }
 0x6bf   :  { %v1286_v61 = vmul.f32 0.2, %v1282_v57  ;;  %v3089_v62 = vpop.f32.mrb[11].mxu0  ;;  %v2745_v57 = vld [vmem:[%s4368_s19] ss:$0 sm:$0xff] }
 0x6c0   :  { %v1356_v1 = vpop.f32.mrb[12].mxu1  ;;  %v1155_v58 = vadd.f32 %v2745_v57, %v4182_v56 }
 0x6c1   :  { %v1361_v2 = vmul.f32 %v1286_v61, %v1286_v61  ;;  %v1360_v3 = vmul.f32 0.2, %v1356_v1  ;;  %v3112_v4 = vpop.f32.mrb[13].mxu1 }
 0x6c3   :  { %v1362_v5 = vsub.f32 %v1360_v3, %v1361_v2 }
 0x6c5   :  { %v1363_v26 = vadd.f32 1e-05, %v1362_v5  ;;  %v1759_v5 = vld [vmem:[%s4369_s24] sm:$0xff] }
 0x6c7   :  { %3561 = vrsqrt.f32 %v1363_v26  ;;  %v1160_v26 = vadd.f32 %v4180_v55, %v2745_v57  ;;  %v4262_v57 = vld [vmem:[%s3848_s6] sm:$0xff] }
 0x6c8   :  { %vm2512_vm12 = vcmp.gt.f32.partialorder %v4262_v57, 0.0 }
 0x6d1   :  { %v3562_v29 = vpop.eup %3561 }
 0x6d2   :  { %v1366_v8 = vrot.slane %v3562_v29, 7 }
 0x6d4   :  { %v1368_v9 = vmul.f32 %v1366_v8, %v4053_v10  ;;  %v3421_v10 = vpack.c.bf16 %v1542_v0, %v1541_v63  ;;  %v2757_v8 = vld [vmem:[%s4370_s12] ss:$0 sm:$0xff] }
 0x6d6   :  { %v1370_v11 = vrot.slane %v1368_v9, 1  ;;  %3422 = vmatprep.subr.bf16.mxu1 %v3421_v10 }
 0x6d7   :  { %3424 = vmatpush3.bf16.msra.mxu1 %v3421_v10 }
 0x6d8   :  { %v1372_v6 = vmul.f32 %v1370_v11, %v1286_v61  ;;  %3118 = vmatmul.mubr.msk.f32.vlgmr.msra.gmra.mrb[12].mxu0 %vm424_vm2, %v1370_v11  ;;  %3426 = vmatprep.subr.bf16.mxu1 %v3425_v21 }
 0x6d9   :  { %3412 = vmatpush3.bf16.msra.mxu0 %v3408_v48  ;;  %3124 = vmatprep.mubr.msk.f32.mxu0 %vm3672_vm1, %v3668_v59 }
 0x6da   :  { %v1374_v12 = vrot.slane %v1372_v6, 7 }
 0x6db   :  { %3428 = vmatpush3.bf16.msra.mxu1 %v3425_v21 }
 0x6dc   :  { %v1376_v13 = vsub.f32 %v4061_v19, %v1374_v12  ;;  %3430 = vmatprep.subr.bf16.mxu1 %v3429_v24 }
 0x6de   :  { %v1452_v7 = vrot.slane %v1376_v13, 1 }
 0x6df   :  { %3432 = vmatpush3.bf16.msra.mxu1 %v3429_v24 }
 0x6e0   :  { %3125 = vmatmul.mubr.msk.f32.vlgmr.msra.gmra.mrb[14].mxu0 %vm424_vm2, %v1452_v7  ;;  %3179 = vmatprep.subr.mxu1 %v3668_v59 }
 0x7ab   :  { %v1447_v19 = vpop.f32.mrb[12].mxu0 }
 0x7ac   :  { %v3119_v27 = vpop.f32.mrb[13].mxu0  ;;  %v1528_v28 = vrot.slane %v1447_v19, %v3933_v18 }
 0x7ae   :  { %v1529_v31 = vmul.f32 %v1528_v28, %v4147_v16  ;;  %v1530_v17 = vmul.f32 %v1528_v28, %v4150_v22 }
 0x7b3   :  { %v1521_v30 = vpop.f32.mrb[14].mxu0 }
 0x7b4   :  { %v1534_v20 = vrot.slane %v1521_v30, %v3933_v18  ;;  %v3126_v32 = vpop.f32.mrb[15].mxu0  ;;  %v1659_v18 = vld [vmem:[%s4365_s3] sm:$0xff] }
 0x7b5   :  { %v3433_v42 = vpack.c.bf16 %v1660_v40, %v1659_v18 }
 0x7b6   :  { %v1535_v33 = vadd.f32 %v1534_v20, %v1529_v31  ;;  %v1536_v34 = vadd.f32 %v1534_v20, %v1530_v17 }
 0x7b7   :  { %3434 = vmatprep.subr.bf16.mxu0 %v3433_v42 }
 0x7b8   :  { %3147 = vmatprep.mubr.msk.f32.mxu1 %vm1081_vm5, %v1535_v33  ;;  %3436 = vmatpush3.bf16.msra.mxu0 %v3433_v42 }
 0x7b9   :  { %3148 = vmatmul.mubr.msk.f32.vlgmr.msra.gmra.mrb[14].mxu1 %vm1081_vm5, %v1536_v34  ;;  %3437 = vmatprep.subr.bf16.mxu0 %v3669_v41  ;;  %v1760_v41 = vld [vmem:[%s4367_s14] sm:$0xff] }
 0x7ba   :  { %3181 = vmatprep.mubr.msk.f32.mxu1 %vm3672_vm1, %v3668_v59  ;;  %v3438_v2 = vpack.c.bf16 %v1761_v52, %v1760_v41 }
 0x88c   :  { %v3149_v36 = vpop.f32.mrb[14].mxu1 }
 0x88d   :  { %v1632_v37 = vadd.f32 %v3149_v36, %v2752_v35  ;;  %v1626_v16 = vpop.f32.mrb[15].mxu1 }
 0x88e   :  { %v1627_v38 = vadd.f32 %v2752_v35, %v1626_v16 }
 0x88f   :  { %v2756_v22 = vmul.f32 -1.442695, %v1632_v37 }
 0x890   :  { %v2755_v39 = vmul.f32 -1.442695, %v1627_v38 }
 0x891   :  { %3563 = vpow2.f32 %v2756_v22 }
 0x892   :  { %3565 = vpow2.f32 %v2755_v39 }
 0x89b   :  { %v3564_v43 = vpop.eup %3563 }
 0x89c   :  { %v3566_v44 = vpop.eup %3565  ;;  %v1644_v45 = vadd.f32 1.0, %v3564_v43  ;;  %v2164_v43 = vld [vmem:[%s4371_s27] sm:$0xff] }
 0x89d   :  { %v1643_v46 = vadd.f32 1.0, %v3566_v44  ;;  %v2165_v44 = vld [vmem:[%s4371_s27 + $0x8] sm:$0xff] }
 0x89e   :  { %3567 = vrcp.f32 %v1644_v45  ;;  %v2166_v45 = vld [vmem:[%s4371_s27 + $0x10] sm:$0xff] }
 0x89f   :  { %3569 = vrcp.f32 %v1643_v46  ;;  %v3441_v46 = vpack.c.bf16 %v2165_v44, %v2164_v43 }
 0x8a0   :  { %3571 = vtanh.f32 %v1627_v38 }
 0x8a1   :  { %3573 = vtanh.f32 %v1632_v37 }
 0x8a8   :  { %v3568_v47 = vpop.eup %3567 }
 0x8a9   :  { %v3570_v48 = vpop.eup %3569  ;;  %1653 = vrot.lane.b32.xlu1 %v3568_v47, %s3671_s5  ;;  %v2167_v47 = vld [vmem:[%s4371_s27 + $0x18] sm:$0xff] }
 0x8aa   :  { %1651 = vrot.lane.b32.xlu0 %v3570_v48, %s3671_s5  ;;  %v3572_v54 = vpop.eup %3571  ;;  %v3445_v48 = vpack.c.bf16 %v2167_v47, %v2166_v45  ;;  %s3611_s5 = scalar_lea.vmem %s2679_s7, 32 }
 0x8ab   :  { %v3574_v62 = vpop.eup %3573 }
 0x8ae   :  { %1165 = vrot.lane.b32.xlu0 %v526_v50, %s3674_s17  ;;  %v2169_v50 = vld [vmem:[%s4371_s27 + $0x28] sm:$0xff] }
 0x8b2   :  { %1167 = vrot.lane.b32.xlu0 %v531_v51, %s3674_s17  ;;  %v3449_v51 = vpack.c.bf16 %v2169_v50, %v2168_v49 }
 0x91b   :  { %v1654_v53 = vpop.permute.xlu1 %1653 }
 0x91c   :  { %v1652_v61 = vpop.permute.xlu0 %1651  ;;  %v1658_v60 = vmul.f32 %v3574_v62, %v1654_v53  ;;  %v3678_v62 = vmov 0  }
 0x91d   :  { %v1657_v1 = vmul.f32 %v3572_v54, %v1652_v61  ;;  %v4265_v61 = vld [vmem:[%s3848_s6 + $0x8] sm:$0xff]  ;;  %3518 = vset.pattern.permute.xlu1 %v3678_v62  ;;  %3512 = vset.pattern.permute.xlu0 %v3678_v62  ;;  %s4372_s6 = sld [smem:[#allocation21_spill]] }
 0x91e   :  { %vm2513_vm13 = vcmp.gt.f32.partialorder %v4265_v61, 0.0 }
 0x91f   :  { %3154 = vmatprep.mubr.msk.f32.mxu0 %vm424_vm2, %v1657_v1  ;;  %v2783_v1 = vsel %vm2512_vm12, 1.0, %v3668_v59 }
 0x920   :  { %3155 = vmatmul.mubr.msk.f32.vlgmr.msra.gmra.mrb[16].mxu0 %vm424_vm2, %v1658_v60  ;;  %v1166_v3 = vpop.permute.xlu0 %1165  ;;  %v2557_v60 = vsub.f32 1.0, %v2783_v1 }
 0x921   :  { %v1171_v4 = vadd.f32 %v1166_v3, %v1155_v58  ;;  %3440 = vmatpush3.bf16.msk.msra.mxu0 %vm3439_vm8, %v3438_v2  ;;  %3161 = vmatprep.mubr.msk.f32.mxu0 %vm3672_vm1, %v3668_v59  ;;  %v2784_v2 = vsel %vm2513_vm13, 1.0, %v3668_v59  ;;  %v2559_v58 = vsel %vm2542_vm11, %v2783_v1, 0.0 }
 0x922   :  { %3164 = vmatprep.subr.mxu0 %v3668_v59  ;;  %v2560_v3 = vsel %vm2542_vm11, %v2784_v2, 0.0 }
 0x923   :  { %1751 = vrot.lane.b32.xlu1 %v1171_v4, %s3676_s20  ;;  %v3513_v4 = vpack.i.bf16 %v2784_v2, %v2783_v1 }
 0x924   :  { %3162 = vmatmul.mubr.msk.f32.vlgmr.msra.gmra.mrb[18].mxu0 %vm1762_vm9, %v1759_v5  ;;  %v1168_v56 = vpop.permute.xlu0 %1167  ;;  %v2561_v5 = vadd.f32 %v2560_v3, %v2559_v58 }
 0x925   :  { %v1172_v29 = vadd.f32 %v1168_v56, %v1160_v26  ;;  %3166 = vmatprep.mubr.msk.f32.mxu0 %vm3672_vm1, %v3668_v59  ;;  %v2558_v26 = vsub.f32 1.0, %v2784_v2  ;;  %v2569_v56 = vsel %vm2542_vm11, %v2557_v60, 0.0 }
 0x927   :  { %1753 = vrot.lane.b32.xlu1 %v1172_v29, %s3676_s20  ;;  %v2570_v29 = vsel %vm2542_vm11, %v2558_v26, 0.0 }
 0x995   :  { %v1752_v13 = vpop.permute.xlu1 %1751 }
 0x999   :  { %v1754_v37 = vpop.permute.xlu1 %1753 }
 0x9f3   :  { %v3156_v9 = vpop.f32.mrb[16].mxu0 }
 0x9f4   :  { %v1746_v11 = vadd.f32 %v3156_v9, %v2757_v8  ;;  %v1740_v6 = vpop.f32.mrb[17].mxu0  ;;  %v2571_v9 = vadd.f32 %v2570_v29, %v2569_v56 }
 0x9f5   :  { %v1741_v12 = vadd.f32 %v2757_v8, %v1740_v6  ;;  %v2562_v8 = vrot.slane %v2561_v5, 4 }
 0x9f6   :  { %v4239_v38 = vadd.f32 %v1754_v37, %v1746_v11  ;;  %v2572_v6 = vrot.slane %v2571_v9, 4 }
 0x9f7   :  { %v4230_v7 = vadd.f32 %v1752_v13, %v1741_v12  ;;  %v1836_v63 = vpop.f32.mrb[18].mxu0  ;;  %v2563_v11 = vadd.f32 %v2562_v8, %v2561_v5 }
 0x9f8   :  { %v1840_v55 = vmax.f32 %v1836_v63, 0.0  ;;  %v3163_v0 = vpop.f32.mrb[19].mxu0 }
 0x9f9   :  { %3165 = vmatpush3.msra.mxu0 %v4230_v7  ;;  %v2564_v12 = vrot.slane %v2563_v11, 2 }
 0x9fa   :  { %v1842_v10 = vsel %vm1841_vm10, %v1840_v55, -inf  ;;  %3169 = vmatprep.subr.mxu0 %v3668_v59 }
 0x9fb   :  { %v1843_v14 = vrot.slane %v1842_v10, 4  ;;  %v2565_v63 = vadd.f32 %v2564_v12, %v2563_v11 }
 0x9fd   :  { %v1844_v15 = vmax.f32 %v1842_v10, %v1843_v14  ;;  %v2566_v0 = vrot.slane %v2565_v63, 1 }
 0x9ff   :  { %v1845_v21 = vrot.slane %v1844_v15, 2  ;;  %v2567_v14 = vadd.f32 %v2566_v0, %v2565_v63  ;;  %v2776_v0 = vld [vmem:[%s4376_s15] ss:$0 sm:$0xff] }
 0xa01   :  { %v1846_v23 = vmax.f32 %v1844_v15, %v1845_v21  ;;  %v2568_v21 = vmax.f32 %v2567_v14, 1.0 }
 0xa03   :  { %v1847_v25 = vrot.slane %v1846_v23, 1 }
 0xa05   :  { %v1848_v24 = vmax.f32 %v1846_v23, %v1847_v25 }
 0xa07   :  { %v1849_v19 = vsub.f32 %v1840_v55, %v1848_v24 }
 0xa09   :  { %v1850_v27 = vmul.f32 1.442695, %v1849_v19 }
 0xa0b   :  { %3575 = vpow2.f32 %v1850_v27 }
 0xa15   :  { %v3576_v28 = vpop.eup %3575 }
 0xa16   :  { %v1852_v30 = vsel %vm1841_vm10, %v3576_v28, 0.0 }
 0xa17   :  { %v1853_v31 = vrot.slane %v1852_v30, 4 }
 0xa19   :  { %v1854_v17 = vadd.f32 %v1853_v31, %v1852_v30  ;;  %v2260_v30 = vld [vmem:[%s4372_s6] sm:$0xff]  ;;  %v2261_v31 = vld [vmem:[%s4372_s6 + $0x8] sm:$0xff] }
 0xa1b   :  { %v1855_v20 = vrot.slane %v1854_v17, 2 }
 0xa1d   :  { %v1856_v32 = vadd.f32 %v1855_v20, %v1854_v17  ;;  %v3453_v17 = vpack.c.bf16 %v2261_v31, %v2260_v30  ;;  %v2388_v20 = vld [vmem:[%s4373_s10] sm:$0xff] }
 0xa1f   :  { %v1857_v33 = vrot.slane %v1856_v32, 1 }
 0xa21   :  { %v1858_v34 = vadd.f32 %v1857_v33, %v1856_v32  ;;  %v2389_v32 = vld [vmem:[%s4373_s10 + $0x8] sm:$0xff] }
 0xa22   :  { %v3457_v33 = vpack.c.bf16 %v2389_v32, %v2388_v20 }
 0xa23   :  { %3577 = vrcp.f32 %v1858_v34 }
 0xa2d   :  { %v3578_v35 = vpop.eup %3577 }
 0xa2e   :  { %v1860_v36 = vmul.f32 %v3578_v35, %v3576_v28  ;;  %v2766_v35 = vld [vmem:[%s4374_s11] ss:$0 sm:$0xff] }
 0xa30   :  { %3167 = vmatmul.mubr.msk.f32.vlgmr.msra.gmra.mrb[20].mxu0 %vm1841_vm10, %v1860_v36 }
 0xa31   :  { %3171 = vmatprep.mubr.msk.f32.mxu0 %vm3672_vm1, %v3668_v59 }
 0xb03   :  { %v1930_v16 = vpop.f32.mrb[20].mxu0 }
 0xb04   :  { %2005 = vrot.lane.b32.xlu0 %v1930_v16, %s3670_s0  ;;  %v3168_v22 = vpop.f32.mrb[21].mxu0  ;;  %3170 = vmatpush3.msra.mxu0 %v1930_v16 }
 0xb05   :  { %3172 = vmatmul.mubr.msk.f32.vlgmr.msra.gmra.mrb[22].mxu0 %vm1841_vm10, %v1860_v36  ;;  %3174 = vmatprep.subr.mxu0 %v3668_v59 }
 0xb06   :  { %3175 = vmatpush3.msra.mxu0 %v4239_v38  ;;  %3176 = vmatprep.mubr.msk.f32.mxu0 %vm3672_vm1, %v3668_v59  ;;  %v2573_v59 = vadd.f32 %v2572_v6, %v2571_v9 }
 0xb07   :  { %3442 = vmatprep.subr.bf16.mxu0 %v3441_v46 }
 0xb08   :  { %v2574_v55 = vrot.slane %v2573_v59, 2 }
 0xb09   :  { %3177 = vmatmul.mubr.msk.f32.vlgmr.msra.gmra.mrb[24].mxu0 %vm1841_vm10, %v1860_v36 }
 0xb0a   :  { %3444 = vmatpush3.bf16.msra.mxu0 %v3441_v46  ;;  %v2575_v10 = vadd.f32 %v2574_v55, %v2573_v59  ;;  %v2769_v59 = vld [vmem:[%s4375_s16] ss:$0 sm:$0xff] }
 0xb0b   :  { %3446 = vmatprep.subr.bf16.mxu0 %v3445_v48 }
 0xb0c   :  { %v2576_v15 = vrot.slane %v2575_v10, 1 }
 0xb0e   :  { %3448 = vmatpush3.bf16.msra.mxu0 %v3445_v48  ;;  %v2577_v23 = vadd.f32 %v2576_v15, %v2575_v10  ;;  %v2772_v10 = vld [vmem:[%s4377_s18] ss:$0 sm:$0xff] }
 0xb0f   :  { %3450 = vmatprep.subr.bf16.mxu0 %v3449_v51 }
 0xb10   :  { %v2578_v25 = vmax.f32 %v2577_v23, 1.0 }
 0xb12   :  { %3452 = vmatpush3.bf16.msra.mxu0 %v3449_v51 }
 0xb76   :  { %v2006_v41 = vpop.permute.xlu0 %2005 }
 0xb77   :  { %v2012_v52 = vsel %vm424_vm2, %v4230_v7, %v2006_v41 }
 0xbd8   :  { %v2000_v39 = vpop.f32.mrb[22].mxu0 }
 0xbd9   :  { %v3173_v18 = vpop.f32.mrb[23].mxu0  ;;  %2009 = vrot.lane.b32.xlu1 %v2000_v39, %s3677_s4 }
 0xbdc   :  { %v2080_v40 = vpop.f32.mrb[24].mxu0 }
 0xbdd   :  { %2155 = vrot.lane.b32.xlu0 %v2080_v40, %s3670_s0  ;;  %v3178_v42 = vpop.f32.mrb[25].mxu0  ;;  %3180 = vmatpush3.msra.mxu1 %v2080_v40  ;;  %s3607_s0 = scalar_lea.vmem %s2679_s7, 16 }
 0xbde   :  { %3182 = vmatmul.mubr.msk.f32.vlgmr.msra.gmra.mrb[16].mxu1 %vm1841_vm10, %v1860_v36  ;;  %3454 = vmatprep.subr.bf16.mxu1 %v3453_v17  ;;  %p3608_p0 = scmp.ne.s32.totalorder %s2679_s7, %s3607_s0  ;;  %p3613_p2 = scmp.lt.s32.totalorder %s3611_s5, %s3607_s0 }
 0xbdf   :  { %3456 = vmatpush3.bf16.msra.mxu1 %v3453_v17 }
 0xbe0   :  { %3458 = vmatprep.subr.bf16.mxu1 %v3457_v33  ;;  %p3614_p3 = por %p3613_p2, %p3612_p1 }
 0xbe1   :  { %3514 = vperm.xlu0 %3512, %v3513_v4  }
 0xbe2   :  { %p3615_p4 = pnand %p3614_p3, %p3608_p0 }
 0xbe5   :  { %2602 = vperm.xlu0 %3512, %v2568_v21  }
 0xc4b   :  { %v2010_v53 = vpop.permute.xlu1 %2009 }
 0xc4c   :  { %v2013_v54 = vsel %vm181_vm0, %v2012_v52, %v2010_v53 }
 0xc4d   :  { %3196 = vmatprep.mubr.msk.f32.mxu0 %vm1057_vm4, %v2013_v54 }
 0xc4f   :  { %v2156_v24 = vpop.permute.xlu0 %2155 }
 0xc50   :  { %v2162_v19 = vsel %vm424_vm2, %v4239_v38, %v2156_v24 }
 0xc60   :  { %v3515_v36 = vpop.permute.xlu0 %3514 }
 0xc61   :  { %v3517_v22 = vunpack.i.h.bf16 %v3515_v36  ;;  %v3516_v18 = vunpack.i.l.bf16 %v3515_v36 }
 0xc64   :  { %v2603_v51 = vpop.permute.xlu0 %2602 }
 0xcb1   :  { %v2150_v13 = vpop.f32.mrb[16].mxu1 }
 0xcb2   :  { %2159 = vrot.lane.b32.xlu1 %v2150_v13, %s3677_s4  ;;  %v3183_v7 = vpop.f32.mrb[17].mxu1 }
 0xcb6   :  { %2609 = vperm.xlu1 %3518, %v2557_v60  }
 0xcba   :  { %2614 = vperm.xlu1 %3518, %v2558_v26  }
 0xcbe   :  { %2630 = vperm.xlu1 %3518, %v2578_v25  }
 0xd24   :  { %v2160_v27 = vpop.permute.xlu1 %2159 }
 0xd25   :  { %v2163_v28 = vsel %vm181_vm0, %v2162_v19, %v2160_v27  ;;  %v2779_v27 = vld [vmem:[%s4378_s23] ss:$0 sm:$0xff] }
 0xd26   :  { %3197 = vmatmul.mubr.msk.f32.vlgmr.msra.gmra.mrb[26].mxu0 %vm1057_vm4, %v2163_v28 }
 0xd35   :  { %v2610_v34 = vpop.permute.xlu1 %2609 }
 0xd39   :  { %v2615_v40 = vpop.permute.xlu1 %2614 }
 0xd3d   :  { %v2631_v48 = vpop.permute.xlu1 %2630 }
 0xd3e   :  { %3579 = vrcp.f32 %v2631_v48 }
 0xd3f   :  { %3581 = vrcp.f32 %v2603_v51 }
 0xd48   :  { %v3580_v26 = vpop.eup %3579 }
 0xd49   :  { %v3582_v8 = vpop.eup %3581 }
 0xdf9   :  { %v3198_v37 = vpop.f32.mrb[26].mxu0 }
 0xdfa   :  { %v2255_v16 = vadd.f32 %v3198_v37, %v2766_v35  ;;  %v2249_v38 = vpop.f32.mrb[27].mxu0 }
 0xdfb   :  { %v2250_v39 = vadd.f32 %v2766_v35, %v2249_v38  ;;  %v2773_v38 = vld [vmem:[#allocation2] ss:$0 sm:$0xff] }
 0xdfc   :  { %v2259_v42 = vmax.f32 %v2255_v16, 0.0 }
 0xdfd   :  { %v2258_v43 = vmax.f32 %v2250_v39, 0.0 }
 0xdfe   :  { %v2590_v44 = vmul.f32 %v3517_v22, %v2259_v42  ;;  %v2618_v45 = vmul.f32 %v2615_v40, %v2259_v42 }
 0xdff   :  { %v2589_v46 = vmul.f32 %v3516_v18, %v2258_v43  ;;  %v2617_v47 = vmul.f32 %v2610_v34, %v2258_v43  ;;  %3203 = vmatprep.mubr.msk.f32.mxu1 %vm424_vm2, %v2258_v43  ;;  %v2780_v18 = vld [vmem:[#allocation3] ss:$0 sm:$0xff] }
 0xe00   :  { %v2592_v49 = vsel %vm424_vm2, %v2590_v44, 0.0  ;;  %v2620_v50 = vsel %vm424_vm2, %v2618_v45, 0.0  ;;  %3204 = vmatmul.mubr.msk.f32.vlgmr.msra.gmra.mrb[18].mxu1 %vm424_vm2, %v2259_v42 }
 0xe01   :  { %v2591_v41 = vsel %vm424_vm2, %v2589_v46, 0.0  ;;  %v2619_v52 = vsel %vm424_vm2, %v2617_v47, 0.0  ;;  %3460 = vmatpush3.bf16.msra.mxu1 %v3457_v33  ;;  %3210 = vmatprep.mubr.msk.f32.mxu1 %vm424_vm2, %v2258_v43 }
 0xe02   :  { %v2593_v53 = vadd.f32 %v2592_v49, %v2591_v41  ;;  %v2621_v54 = vadd.f32 %v2620_v50, %v2619_v52 }
 0xe04   :  { %v2594_v62 = vrot.slane %v2593_v53, 4  ;;  %v2622_v1 = vrot.slane %v2621_v54, 4  ;;  %3211 = vmatmul.mubr.msk.f32.vlgmr.msra.gmra.mrb[20].mxu1 %vm424_vm2, %v2259_v42 }
 0xe06   :  { %v2595_v2 = vadd.f32 %v2594_v62, %v2593_v53  ;;  %v2623_v60 = vadd.f32 %v2622_v1, %v2621_v54 }
 0xe08   :  { %v2596_v58 = vrot.slane %v2595_v2, 2  ;;  %v2624_v3 = vrot.slane %v2623_v60, 2 }
 0xe0a   :  { %v2625_v4 = vadd.f32 %v2624_v3, %v2623_v60  ;;  %v2597_v5 = vadd.f32 %v2596_v58, %v2595_v2 }
 0xe0c   :  { %v2598_v56 = vrot.slane %v2597_v5, 1  ;;  %v2626_v29 = vrot.slane %v2625_v4, 1 }
 0xe0e   :  { %v2599_v9 = vadd.f32 %v2598_v56, %v2597_v5  ;;  %v2627_v11 = vadd.f32 %v2626_v29, %v2625_v4 }
 0xe10   :  { %v2606_v6 = vmul.f32 %v3582_v8, %v2599_v9  ;;  %v2634_v12 = vmul.f32 %v3580_v26, %v2627_v11  ;;  %v2516_v8 = vld [vmem:[%s4379_s1] sm:$0xff] }
 0xe12   :  { %v2635_v13 = vsub.f32 %v2606_v6, %v2634_v12  ;;  %v2517_v6 = vld [vmem:[%s4379_s1 + $0x8] sm:$0xff] }
 0xe13   :  { %v2535_v61 = vsub.f32 1.0, %v2517_v6 }
 0xe14   :  { %v2636_v34 = vmul.f32 %v2635_v13, %v2635_v13 }
 0xe16   :  { %v2637_v37 = vsel %vm424_vm2, %v2636_v34, 0.0 }
 0xed3   :  { %v3205_v7 = vpop.f32.mrb[18].mxu1 }
 0xed4   :  { %v2341_v63 = vpop.f32.mrb[19].mxu1  ;;  %v2347_v14 = vadd.f32 %v3205_v7, %v2769_v59 }
 0xed5   :  { %v2342_v55 = vadd.f32 %v2769_v59, %v2341_v63  ;;  %v2534_v59 = vsub.f32 1.0, %v2516_v8 }
 0xed6   :  { %v2351_v30 = vmax.f32 %v2347_v14, 0.0 }
 0xed7   :  { %v2350_v15 = vmax.f32 %v2342_v55, 0.0  ;;  %v3212_v21 = vpop.f32.mrb[20].mxu1 }
 0xed8   :  { %v2469_v23 = vadd.f32 %v3212_v21, %v2776_v0  ;;  %v2463_v25 = vpop.f32.mrb[21].mxu1  ;;  %v2360_v36 = vmul.f32 %v2772_v10, %v2351_v30 }
 0xed9   :  { %v2464_v24 = vadd.f32 %v2776_v0, %v2463_v25  ;;  %v2359_v19 = vmul.f32 %v2772_v10, %v2350_v15 }
 0xeda   :  { %v2473_v28 = vmax.f32 %v2469_v23, 0.0  ;;  %v2364_v16 = vsel %vm424_vm2, %v2360_v36, 0.0 }
 0xedb   :  { %v2472_v31 = vmax.f32 %v2464_v24, 0.0  ;;  %v2361_v17 = vsel %vm424_vm2, %v2359_v19, 0.0 }
 0xedc   :  { %2362 = vadd.xlane.f32.xlu0 %v2361_v17  ;;  %v2482_v20 = vmul.f32 %v2779_v27, %v2473_v28 }
 0xedd   :  { %v2481_v32 = vmul.f32 %v2779_v27, %v2472_v31 }
 0xede   :  { %v2486_v33 = vsel %vm424_vm2, %v2482_v20, 0.0 }
 0xedf   :  { %2487 = vadd.xlane.f32.xlu1 %v2486_v33  ;;  %v2483_v35 = vsel %vm424_vm2, %v2481_v32, 0.0 }
 0xee0   :  { %2484 = vadd.xlane.f32.xlu0 %v2483_v35  ;;  %v2640_v35 = vld [vmem:[#allocation4] sm:$0x1] }
 0xee3   :  { %2638 = vadd.xlane.f32.xlu1 %v2637_v37 }
 0xee4   :  { %2365 = vadd.xlane.f32.xlu0 %v2364_v16 }
 0xf69   :  { %v2363_v22 = vpop.xlane.xlu0 %2362 }
 0xf6a   :  { %v2374_v39 = vadd.f32 %v2773_v38, %v2363_v22 }
 0xf6c   :  { %v2774_v40 = vmul.f32 -1.442695, %v2374_v39  ;;  %v2488_v42 = vpop.xlane.xlu1 %2487 }
 0xf6d   :  { %v2497_v43 = vadd.f32 %v2780_v18, %v2488_v42  ;;  %v2485_v44 = vpop.xlane.xlu0 %2484 }
 0xf6e   :  { %3583 = vpow2.f32 %v2774_v40  ;;  %v2496_v45 = vadd.f32 %v2780_v18, %v2485_v44 }
 0xf6f   :  { %v2782_v46 = vmul.f32 -1.442695, %v2497_v43 }
 0xf70   :  { %v2781_v47 = vmul.f32 -1.442695, %v2496_v45  ;;  %v2639_v36 = vpop.xlane.xlu1 %2638 }
 0xf71   :  { %3585 = vpow2.f32 %v2782_v46  ;;  %v2366_v48 = vpop.xlane.xlu0 %2365  ;;  %v2641_v16 = vadd.f32 %v2640_v35, %v2639_v36 }
 0xf72   :  { %3587 = vpow2.f32 %v2781_v47  ;;  %v2375_v49 = vadd.f32 %v2773_v38, %v2366_v48 }
 0xf73   :  { %v2642_v39 = vmul.f32 0.5, %v2641_v16 }
 0xf74   :  { %v2775_v50 = vmul.f32 -1.442695, %v2375_v49 }
 0xf76   :  { %3589 = vpow2.f32 %v2775_v50 }
 0xf78   :  { %v3584_v51 = vpop.eup %3583 }
 0xf79   :  { %v2382_v41 = vadd.f32 1.0, %v3584_v51 }
 0xf7b   :  { %v3586_v52 = vpop.eup %3585  ;;  %3591 = vrcp.f32 %v2382_v41 }
 0xf7c   :  { %v3588_v53 = vpop.eup %3587  ;;  %v2505_v54 = vadd.f32 1.0, %v3586_v52 }
 0xf7d   :  { %v2504_v62 = vadd.f32 1.0, %v3588_v53 }
 0xf7e   :  { %3593 = vrcp.f32 %v2505_v54 }
 0xf7f   :  { %3595 = vrcp.f32 %v2504_v62 }
 0xf80   :  { %v3590_v1 = vpop.eup %3589 }
 0xf81   :  { %v2383_v2 = vadd.f32 1.0, %v3590_v1 }
 0xf83   :  { %3597 = vrcp.f32 %v2383_v2 }
 0xf85   :  { %v3592_v60 = vpop.eup %3591 }
 0xf88   :  { %v3594_v58 = vpop.eup %3593 }
 0xf89   :  { %v3596_v3 = vpop.eup %3595  ;;  %2650 = vrot.lane.b32.xlu1 %v3594_v58, %s3679_s26 }
 0xf8a   :  { %2648 = vrot.lane.b32.xlu0 %v3596_v3, %s3679_s26  ;;  %v4308_v4 = vsel %vm2512_vm12, %v3592_v60, %v3596_v3 }
 0xf8b   :  { %3599 = vlog2.f32 %v4308_v4  ;;  %v2524_v5 = vsub.f32 1.0, %v4308_v4 }
 0xf8d   :  { %v3598_v26 = vpop.eup %3597  ;;  %2656 = vrot.lane.b32.xlu1 %v3592_v60, %s3680_s28  ;;  %3601 = vlog2.f32 %v2524_v5 }
 0xf8e   :  { %2658 = vrot.lane.b32.xlu0 %v3598_v26, %s3680_s28  ;;  %v4314_v56 = vsel %vm2513_vm13, %v3598_v26, %v3594_v58 }
 0xf8f   :  { %3603 = vlog2.f32 %v4314_v56  ;;  %v2525_v57 = vsub.f32 1.0, %v4314_v56 }
 0xf91   :  { %3605 = vlog2.f32 %v2525_v57 }
 0xf95   :  { %v3600_v29 = vpop.eup %3599 }
 0xf96   :  { %v2519_v9 = vmul.f32 0.6931472, %v3600_v29 }
 0xf97   :  { %v3602_v11 = vpop.eup %3601 }
 0xf98   :  { %v2522_v12 = vmax.f32 %v2519_v9, -100.0  ;;  %v2527_v13 = vmul.f32 0.6931472, %v3602_v11 }
 0xf99   :  { %v3604_v7 = vpop.eup %3603 }
 0xf9a   :  { %v2521_v63 = vmul.f32 0.6931472, %v3604_v7  ;;  %v2530_v55 = vmax.f32 %v2527_v13, -100.0  ;;  %v2532_v15 = vmul.f32 %v2522_v12, %v2516_v8 }
 0xf9b   :  { %v3606_v0 = vpop.eup %3605 }
 0xf9c   :  { %v2523_v10 = vmax.f32 %v2521_v63, -100.0  ;;  %v2529_v14 = vmul.f32 0.6931472, %v3606_v0  ;;  %v2536_v21 = vmul.f32 %v2534_v59, %v2530_v55 }
 0xf9e   :  { %v2531_v23 = vmax.f32 %v2529_v14, -100.0  ;;  %v2538_v25 = vadd.f32 %v2536_v21, %v2532_v15  ;;  %v2533_v24 = vmul.f32 %v2523_v10, %v2517_v6 }
 0xfa0   :  { %v2537_v19 = vmul.f32 %v2535_v61, %v2531_v23  ;;  %v2540_v28 = vsub.f32 0.0, %v2538_v25 }
 0xfa2   :  { %v2539_v27 = vadd.f32 %v2537_v19, %v2533_v24  ;;  %v2543_v31 = vsel %vm2542_vm11, %v2540_v28, 0.0 }
 0xfa4   :  { %v2541_v30 = vsub.f32 0.0, %v2539_v27 }
 0xfa6   :  { %v2544_v17 = vsel %vm2542_vm11, %v2541_v30, 0.0 }
 0xfa7   :  { %v2545_v20 = vadd.f32 %v2544_v17, %v2543_v31 }
 0xfa9   :  { %v2546_v32 = vrot.slane %v2545_v20, 4 }
 0xfab   :  { %v2547_v33 = vadd.f32 %v2546_v32, %v2545_v20 }
 0xfad   :  { %v2548_v34 = vrot.slane %v2547_v33, 2 }
 0xfaf   :  { %v2549_v37 = vadd.f32 %v2548_v34, %v2547_v33 }
 0xfb1   :  { %v2550_v38 = vrot.slane %v2549_v37, 1 }
 0xfb3   :  { %v2551_v22 = vadd.f32 %v2550_v38, %v2549_v37 }
 0xfb5   :  { %v2552_v18 = vmul.f32 0.0625, %v2551_v22 }
 0xfb7   :  { %v2643_v40 = vadd.f32 %v2642_v39, %v2552_v18 }
 0xfb9   :  { %2645 = vst.msk [vmem:[#allocation5] sm:$0x1] %vm2644_vm14, %v2643_v40 }
 0xfba   :  { %3618 = shalt.err (!%p3615_p4)
}
 0xfbb   :  { %s3619_s9 = scalar_lea.hbm %s3863_s22, 16 }
 0xfbc   :  { %p3620_p5 = scmp.ne.s32.totalorder %s3863_s22, %s3619_s9  ;;  %p3623_p6 = scmp.lt.u32.totalorder %s3619_s9, %s3863_s22 }
 0xfbe   :  { %p3625_p7 = pnand %p3623_p6, %p3620_p5 }
 0xfc0   :  { %3628 = shalt.err (!%p3625_p7)
}
 0xfc1   :  { %2681 = dma.vmem_to_hbm [thread:$0]  %s2679_s7, 16, %s3863_s22, [#allocation6]   ;;  %vm2664_vm15 = vcmask 15360   ;;  %vm2667_vm0 = vcmask 23552  }
 0xffb   :  { %v2651_v42 = vpop.permute.xlu1 %2650 }
 0xffc   :  { %v2649_v43 = vpop.permute.xlu0 %2648  ;;  %v2663_v46 = vsel %vm2542_vm11, %v4314_v56, %v2651_v42 }
 0xffd   :  { %v2662_v44 = vsel %vm2542_vm11, %v4308_v4, %v2649_v43 }
 0xfff   :  { %v2657_v45 = vpop.permute.xlu1 %2656 }
0x1000   :  { %v2665_v47 = vsel %vm2664_vm15, %v2662_v44, %v2657_v45  ;;  %v2659_v48 = vpop.permute.xlu0 %2658 }
0x1001   :  { %2668 = vst.msk [vmem:[%s3858_s30] sm:$0xff] %vm2667_vm0, %v2665_v47  ;;  %v2666_v49 = vsel %vm2664_vm15, %v2663_v46, %v2659_v48 }
0x1002   :  { %2669 = vst.msk [vmem:[%s3858_s30 + $0x8] sm:$0xff] %vm2667_vm0, %v2666_v49 }
0x1003   :  { %3629 = dma.done.wait [#allocation6], 16  }
0x1004   :  { %3630 = vsyncadd [#allocation6], 4294967280 }
0x1005   :  { %2687 = vsyncpa [#allocation6], 1 }

</bundles_post_ra>
